<compile_context>
chip_gen: v6e
topology: v6e:2x2x1
jax: 0.10.0
libtpu: 0.0.40
codegen_flags: <defaults>
</compile_context>

<pallas_src>
import math

import jax
import jax.numpy as jnp
from jax import lax
from jax.experimental import pallas as pl
from jax.experimental.pallas import tpu as pltpu  # noqa: F401  (kept for TPU-specific tuning hooks)

# ---- scaled-down "bert-base-uncased" config (synthetic) ----
VOCAB = 30
MAX_POS = 16
HIDDEN = 32
NUM_LAYERS = 2
NUM_HEADS = 2
HEAD_DIM = HIDDEN // NUM_HEADS
INTERMEDIATE = 64
LIN1_OUT = 256
NUM_LABELS = 2
LN_EPS = 1e-12
PAD_OUT = 128  # lane-dense padded logits width (sliced to NUM_LABELS in the wrapper)


# ----------------------------- in-kernel helpers -----------------------------
def _layernorm(x, g, b):
    mu = jnp.mean(x, axis=-1, keepdims=True)
    var = jnp.mean((x - mu) ** 2, axis=-1, keepdims=True)
    return (x - mu) * lax.rsqrt(var + LN_EPS) * g + b


def _gelu(x):
    # TODO(synk): BERT uses exact erf-GELU; tanh approximation used (lowers cleanly on EUP).
    return 0.5 * x * (1.0 + jnp.tanh(0.7978845608028654 * (x + 0.044715 * x * x * x)))


# ----------------------------- fused Pallas kernel ----------------------------
def fused_bert_kernel(emb_ref, bias_ref, sel_ref,
                      embg_ref, embb_ref,
                      wq_ref, bq_ref, wk_ref, bk_ref, wv_ref, bv_ref,
                      wo_ref, bo_ref, ln1g_ref, ln1b_ref,
                      wi_ref, bi_ref, wo2_ref, bo2_ref, ln2g_ref, ln2b_ref,
                      wp_ref, bp_ref, w1_ref, b1_ref, w2_ref, b2_ref,
                      o_ref):
    B, _, S = bias_ref.shape
    BS = B * S
    scale = 1.0 / math.sqrt(HEAD_DIM)

    # embedding LayerNorm on the whole (B*S, H) slab
    x = _layernorm(emb_ref[...], embg_ref[...], embb_ref[...])      # (BS, H)
    bias = bias_ref[...]                                            # (B, 1, S) additive mask

    for l in range(NUM_LAYERS):                                     # static, unrolled
        attn = jnp.zeros((BS, HIDDEN), jnp.float32)
        for h in range(NUM_HEADS):                                  # static head loop; pre-split weights
            q = jnp.dot(x, wq_ref[l, h], preferred_element_type=jnp.float32) + bq_ref[l, h]
            k = jnp.dot(x, wk_ref[l, h], preferred_element_type=jnp.float32) + bk_ref[l, h]
            v = jnp.dot(x, wv_ref[l, h], preferred_element_type=jnp.float32) + bv_ref[l, h]
            q3 = q.reshape(B, S, HEAD_DIM)
            k3 = k.reshape(B, S, HEAD_DIM)
            v3 = v.reshape(B, S, HEAD_DIM)
            # scores: batched contraction on last dims (no explicit transpose)
            s = jnp.einsum('bqd,bkd->bqk', q3, k3,
                           preferred_element_type=jnp.float32) * scale + bias
            s = s - jnp.max(s, axis=-1, keepdims=True)
            p = jnp.exp(s)
            p = p * pl.reciprocal(jnp.sum(p, axis=-1, keepdims=True), approx=True)
            ctx = jnp.einsum('bqk,bkd->bqd', p, v3,
                             preferred_element_type=jnp.float32).reshape(BS, HEAD_DIM)
            # accumulate attention output with per-head Wo block (no concatenate)
            attn = attn + jnp.dot(ctx, wo_ref[l, h], preferred_element_type=jnp.float32)
        attn = attn + bo_ref[l]
        h1 = _layernorm(x + attn, ln1g_ref[l], ln1b_ref[l])
        ff = _gelu(jnp.dot(h1, wi_ref[l], preferred_element_type=jnp.float32) + bi_ref[l])
        ff = jnp.dot(ff, wo2_ref[l], preferred_element_type=jnp.float32) + bo2_ref[l]
        x = _layernorm(h1 + ff, ln2g_ref[l], ln2b_ref[l])

    # [CLS] extraction as a selection matmul, then pooler + linear1 + linear2 head
    cls = jnp.dot(sel_ref[...], x, preferred_element_type=jnp.float32)          # (B, H)
    pooled = jnp.tanh(jnp.dot(cls, wp_ref[...],
                              preferred_element_type=jnp.float32) + bp_ref[...])
    h1 = jnp.dot(pooled, w1_ref[...], preferred_element_type=jnp.float32) + b1_ref[...]
    # lane-dense padded logits: (B, 128)
    o_ref[...] = jnp.dot(h1, w2_ref[...], preferred_element_type=jnp.float32) + b2_ref[...]


# ----------------------------- wrapper ----------------------------------------
@jax.jit
def custom_bert_forward(params, input_ids, attention_mask):
    B, S = input_ids.shape
    L, NH, Dh = NUM_LAYERS, NUM_HEADS, HEAD_DIM

    # embeddings (gather is glue); token_type_ids assumed all-zero as in the PyTorch call
    emb = (jnp.take(params["word_emb"], input_ids, axis=0)
           + params["pos_emb"][:S][None, :, :]
           + params["type_emb"][0][None, None, :]).astype(jnp.float32)
    emb2d = emb.reshape(B * S, HIDDEN)

    # additive attention bias computed ONCE (not per layer / per grid step)
    bias = ((1.0 - attention_mask.astype(jnp.float32)) * -10000.0)[:, None, :]  # (B, 1, S)

    # [CLS] selection matrix: picks rows 0, S, 2S, ... of the flat (B*S, H) activations
    sel = jnp.zeros((B, B * S), jnp.float32).at[jnp.arange(B), jnp.arange(B) * S].set(1.0)

    def stack(name):
        return jnp.stack([lp[name] for lp in params["layers"]])

    # per-head pre-split weights: [L, NH, H, Dh] / [L, NH, Dh, H]
    wq = stack("wq").reshape(L, HIDDEN, NH, Dh).transpose(0, 2, 1, 3)
    wk = stack("wk").reshape(L, HIDDEN, NH, Dh).transpose(0, 2, 1, 3)
    wv = stack("wv").reshape(L, HIDDEN, NH, Dh).transpose(0, 2, 1, 3)
    bq = stack("bq").reshape(L, NH, 1, Dh)
    bk = stack("bk").reshape(L, NH, 1, Dh)
    bv = stack("bv").reshape(L, NH, 1, Dh)
    wo = stack("wo").reshape(L, NH, Dh, HIDDEN)
    bo = stack("bo").reshape(L, 1, HIDDEN)
    ln1g = stack("ln1_g").reshape(L, 1, HIDDEN)
    ln1b = stack("ln1_b").reshape(L, 1, HIDDEN)
    wi = stack("wi")                                   # (L, H, I)
    bi = stack("bi").reshape(L, 1, INTERMEDIATE)
    wo2 = stack("wo2")                                 # (L, I, H)
    bo2 = stack("bo2").reshape(L, 1, HIDDEN)
    ln2g = stack("ln2_g").reshape(L, 1, HIDDEN)
    ln2b = stack("ln2_b").reshape(L, 1, HIDDEN)

    # pad the final projection to a lane-dense 128-wide output
    w2p = jnp.zeros((LIN1_OUT, PAD_OUT), jnp.float32).at[:, :NUM_LABELS].set(params["lin2_w"])
    b2p = jnp.zeros((1, PAD_OUT), jnp.float32).at[:, :NUM_LABELS].set(params["lin2_b"])

    args = (emb2d, bias, sel,
            params["emb_ln_g"].reshape(1, HIDDEN), params["emb_ln_b"].reshape(1, HIDDEN),
            wq, bq, wk, bk, wv, bv,
            wo, bo, ln1g, ln1b,
            wi, bi, wo2, bo2, ln2g, ln2b,
            params["pooler_w"], params["pooler_b"].reshape(1, HIDDEN),
            params["lin1_w"], params["lin1_b"].reshape(1, LIN1_OUT),
            w2p, b2p)

    # single fused pallas_call, no grid: everything (weights + activations, ~100 KB) lives
    # in VMEM for the whole forward; only inputs and the final logits touch HBM.
    logits_padded = pl.pallas_call(
        fused_bert_kernel,
        out_shape=jax.ShapeDtypeStruct((B, PAD_OUT), jnp.float32),
    )(*args)
    return logits_padded[:, :NUM_LABELS]


# ----------------------------- param init -------------------------------------
def init_params(key):
    def nrm(k, shape, scale=0.02):
        return (scale * jax.random.normal(k, shape)).astype(jnp.float32)

    keys = jax.random.split(key, 8 + NUM_LAYERS)
    params = {
        "word_emb": nrm(keys[0], (VOCAB, HIDDEN)),
        "pos_emb": nrm(keys[1], (MAX_POS, HIDDEN)),
        "type_emb": nrm(keys[2], (2, HIDDEN)),
        "emb_ln_g": jnp.ones((HIDDEN,), jnp.float32),
        "emb_ln_b": jnp.zeros((HIDDEN,), jnp.float32),
        "pooler_w": nrm(keys[3], (HIDDEN, HIDDEN)),
        "pooler_b": jnp.zeros((HIDDEN,), jnp.float32),
        "lin1_w": nrm(keys[4], (HIDDEN, LIN1_OUT)),
        "lin1_b": jnp.zeros((LIN1_OUT,), jnp.float32),
        "lin2_w": nrm(keys[5], (LIN1_OUT, NUM_LABELS)),
        "lin2_b": jnp.zeros((NUM_LABELS,), jnp.float32),
        "layers": [],
    }
    for l in range(NUM_LAYERS):
        lk = jax.random.split(keys[8 + l], 6)
        params["layers"].append({
            "wq": nrm(lk[0], (HIDDEN, HIDDEN)), "bq": jnp.zeros((HIDDEN,), jnp.float32),
            "wk": nrm(lk[1], (HIDDEN, HIDDEN)), "bk": jnp.zeros((HIDDEN,), jnp.float32),
            "wv": nrm(lk[2], (HIDDEN, HIDDEN)), "bv": jnp.zeros((HIDDEN,), jnp.float32),
            "wo": nrm(lk[3], (HIDDEN, HIDDEN)), "bo": jnp.zeros((HIDDEN,), jnp.float32),
            "ln1_g": jnp.ones((HIDDEN,), jnp.float32),
            "ln1_b": jnp.zeros((HIDDEN,), jnp.float32),
            "wi": nrm(lk[4], (HIDDEN, INTERMEDIATE)),
            "bi": jnp.zeros((INTERMEDIATE,), jnp.float32),
            "wo2": nrm(lk[5], (INTERMEDIATE, HIDDEN)),
            "bo2": jnp.zeros((HIDDEN,), jnp.float32),
            "ln2_g": jnp.ones((HIDDEN,), jnp.float32),
            "ln2_b": jnp.zeros((HIDDEN,), jnp.float32),
        })
    return params


# ----------------------------- main --------------------------------------------
if __name__ == "__main__":
    B, S = 2, 8
    key = jax.random.PRNGKey(0)
    pkey, ikey = jax.random.split(key)

    params = init_params(pkey)
    input_ids = jax.random.randint(ikey, (B, S), 0, VOCAB, dtype=jnp.int32)
    attention_mask = jnp.array([[1] * S, [1] * (S - 2) + [0, 0]], dtype=jnp.int32)

    logits = custom_bert_forward(params, input_ids, attention_mask)
    jax.block_until_ready(logits)
    assert logits.shape == (B, NUM_LABELS)
    print("KERNEL_OK")
</pallas_src>

<mosaic_0001>
module attributes {stable_mosaic.version = 11 : i64} {
  func.func @fused_bert_kernel(%arg0: memref<16x32xf32, #tpu.memory_space<vmem>>, %arg1: memref<2x1x8xf32, #tpu.memory_space<vmem>>, %arg2: memref<2x16xf32, #tpu.memory_space<vmem>>, %arg3: memref<1x32xf32, #tpu.memory_space<vmem>>, %arg4: memref<1x32xf32, #tpu.memory_space<vmem>>, %arg5: memref<2x2x32x16xf32, #tpu.memory_space<vmem>>, %arg6: memref<2x2x1x16xf32, #tpu.memory_space<vmem>>, %arg7: memref<2x2x32x16xf32, #tpu.memory_space<vmem>>, %arg8: memref<2x2x1x16xf32, #tpu.memory_space<vmem>>, %arg9: memref<2x2x32x16xf32, #tpu.memory_space<vmem>>, %arg10: memref<2x2x1x16xf32, #tpu.memory_space<vmem>>, %arg11: memref<2x2x16x32xf32, #tpu.memory_space<vmem>>, %arg12: memref<2x1x32xf32, #tpu.memory_space<vmem>>, %arg13: memref<2x1x32xf32, #tpu.memory_space<vmem>>, %arg14: memref<2x1x32xf32, #tpu.memory_space<vmem>>, %arg15: memref<2x32x64xf32, #tpu.memory_space<vmem>>, %arg16: memref<2x1x64xf32, #tpu.memory_space<vmem>>, %arg17: memref<2x64x32xf32, #tpu.memory_space<vmem>>, %arg18: memref<2x1x32xf32, #tpu.memory_space<vmem>>, %arg19: memref<2x1x32xf32, #tpu.memory_space<vmem>>, %arg20: memref<2x1x32xf32, #tpu.memory_space<vmem>>, %arg21: memref<32x32xf32, #tpu.memory_space<vmem>>, %arg22: memref<1x32xf32, #tpu.memory_space<vmem>>, %arg23: memref<32x256xf32, #tpu.memory_space<vmem>>, %arg24: memref<1x256xf32, #tpu.memory_space<vmem>>, %arg25: memref<256x128xf32, #tpu.memory_space<vmem>>, %arg26: memref<1x128xf32, #tpu.memory_space<vmem>>, %arg27: memref<2x128xf32, #tpu.memory_space<vmem>>) attributes {dimension_semantics = [], scalar_prefetch = 0 : i64, scratch_operands = 0 : i64, tpu.core_type = #tpu.core_type<tc>} {
    %c0 = arith.constant 0 : index
    %c0_0 = arith.constant 0 : index
    %0 = vector.load %arg0[%c0, %c0_0] : memref<16x32xf32, #tpu.memory_space<vmem>>, vector<16x32xf32>
    %c0_1 = arith.constant 0 : index
    %c0_2 = arith.constant 0 : index
    %1 = vector.load %arg3[%c0_1, %c0_2] : memref<1x32xf32, #tpu.memory_space<vmem>>, vector<1x32xf32>
    %c0_3 = arith.constant 0 : index
    %c0_4 = arith.constant 0 : index
    %2 = vector.load %arg4[%c0_3, %c0_4] : memref<1x32xf32, #tpu.memory_space<vmem>>, vector<1x32xf32>
    %cst = arith.constant dense<0.000000e+00> : vector<16xf32>
    %3 = vector.multi_reduction <add>, %0, %cst [1] : vector<16x32xf32> to vector<16xf32>
    %4 = vector.shape_cast %3 : vector<16xf32> to vector<16x1xf32>
    %cst_5 = arith.constant 3.200000e+01 : f32
    %5 = vector.broadcast %cst_5 : f32 to vector<16x1xf32>
    %6 = arith.divf %4, %5 : vector<16x1xf32>
    %7 = vector.broadcast %6 : vector<16x1xf32> to vector<16x32xf32>
    %8 = arith.subf %0, %7 : vector<16x32xf32>
    %9 = arith.mulf %8, %8 : vector<16x32xf32>
    %cst_6 = arith.constant dense<0.000000e+00> : vector<16xf32>
    %10 = vector.multi_reduction <add>, %9, %cst_6 [1] : vector<16x32xf32> to vector<16xf32>
    %11 = vector.shape_cast %10 : vector<16xf32> to vector<16x1xf32>
    %cst_7 = arith.constant 3.200000e+01 : f32
    %12 = vector.broadcast %cst_7 : f32 to vector<16x1xf32>
    %13 = arith.divf %11, %12 : vector<16x1xf32>
    %14 = vector.broadcast %6 : vector<16x1xf32> to vector<16x32xf32>
    %15 = arith.subf %0, %14 : vector<16x32xf32>
    %cst_8 = arith.constant 9.99999996E-13 : f32
    %16 = vector.broadcast %cst_8 : f32 to vector<16x1xf32>
    %17 = arith.addf %13, %16 : vector<16x1xf32>
    %18 = math.rsqrt %17 : vector<16x1xf32>
    %19 = vector.broadcast %18 : vector<16x1xf32> to vector<16x32xf32>
    %20 = arith.mulf %15, %19 : vector<16x32xf32>
    %21 = vector.broadcast %1 : vector<1x32xf32> to vector<16x32xf32>
    %22 = arith.mulf %20, %21 : vector<16x32xf32>
    %23 = vector.broadcast %2 : vector<1x32xf32> to vector<16x32xf32>
    %24 = arith.addf %22, %23 : vector<16x32xf32>
    %c0_9 = arith.constant 0 : index
    %c0_10 = arith.constant 0 : index
    %c0_11 = arith.constant 0 : index
    %25 = vector.load %arg1[%c0_9, %c0_10, %c0_11] : memref<2x1x8xf32, #tpu.memory_space<vmem>>, vector<2x1x8xf32>
    %cst_12 = arith.constant 0.000000e+00 : f32
    %26 = vector.broadcast %cst_12 : f32 to vector<16x32xf32>
    %c0_13 = arith.constant 0 : index
    %c0_14 = arith.constant 0 : index
    %c0_15 = arith.constant 0 : index
    %c0_16 = arith.constant 0 : index
    %27 = vector.load %arg5[%c0_13, %c0_14, %c0_15, %c0_16] : memref<2x2x32x16xf32, #tpu.memory_space<vmem>>, vector<1x1x32x16xf32>
    %28 = vector.shape_cast %27 : vector<1x1x32x16xf32> to vector<32x16xf32>
    %cst_17 = arith.constant dense<0.000000e+00> : vector<16x16xf32>
    %29 = tpu.matmul %24, %28, %cst_17 {dimension_numbers = #tpu.dot_dimension_numbers<[1], [0], [0], [1], [0, 0, 1, 1], [], []>} : vector<16x32xf32>, vector<32x16xf32>, vector<16x16xf32> -> vector<16x16xf32>
    %c0_18 = arith.constant 0 : index
    %c0_19 = arith.constant 0 : index
    %c0_20 = arith.constant 0 : index
    %c0_21 = arith.constant 0 : index
    %30 = vector.load %arg6[%c0_18, %c0_19, %c0_20, %c0_21] : memref<2x2x1x16xf32, #tpu.memory_space<vmem>>, vector<1x1x1x16xf32>
    %31 = vector.shape_cast %30 : vector<1x1x1x16xf32> to vector<1x16xf32>
    %32 = vector.broadcast %31 : vector<1x16xf32> to vector<16x16xf32>
    %33 = arith.addf %29, %32 : vector<16x16xf32>
    %c0_22 = arith.constant 0 : index
    %c0_23 = arith.constant 0 : index
    %c0_24 = arith.constant 0 : index
    %c0_25 = arith.constant 0 : index
    %34 = vector.load %arg7[%c0_22, %c0_23, %c0_24, %c0_25] : memref<2x2x32x16xf32, #tpu.memory_space<vmem>>, vector<1x1x32x16xf32>
    %35 = vector.shape_cast %34 : vector<1x1x32x16xf32> to vector<32x16xf32>
    %cst_26 = arith.constant dense<0.000000e+00> : vector<16x16xf32>
    %36 = tpu.matmul %24, %35, %cst_26 {dimension_numbers = #tpu.dot_dimension_numbers<[1], [0], [0], [1], [0, 0, 1, 1], [], []>} : vector<16x32xf32>, vector<32x16xf32>, vector<16x16xf32> -> vector<16x16xf32>
    %c0_27 = arith.constant 0 : index
    %c0_28 = arith.constant 0 : index
    %c0_29 = arith.constant 0 : index
    %c0_30 = arith.constant 0 : index
    %37 = vector.load %arg8[%c0_27, %c0_28, %c0_29, %c0_30] : memref<2x2x1x16xf32, #tpu.memory_space<vmem>>, vector<1x1x1x16xf32>
    %38 = vector.shape_cast %37 : vector<1x1x1x16xf32> to vector<1x16xf32>
    %39 = vector.broadcast %38 : vector<1x16xf32> to vector<16x16xf32>
    %40 = arith.addf %36, %39 : vector<16x16xf32>
    %c0_31 = arith.constant 0 : index
    %c0_32 = arith.constant 0 : index
    %c0_33 = arith.constant 0 : index
    %c0_34 = arith.constant 0 : index
    %41 = vector.load %arg9[%c0_31, %c0_32, %c0_33, %c0_34] : memref<2x2x32x16xf32, #tpu.memory_space<vmem>>, vector<1x1x32x16xf32>
    %42 = vector.shape_cast %41 : vector<1x1x32x16xf32> to vector<32x16xf32>
    %cst_35 = arith.constant dense<0.000000e+00> : vector<16x16xf32>
    %43 = tpu.matmul %24, %42, %cst_35 {dimension_numbers = #tpu.dot_dimension_numbers<[1], [0], [0], [1], [0, 0, 1, 1], [], []>} : vector<16x32xf32>, vector<32x16xf32>, vector<16x16xf32> -> vector<16x16xf32>
    %c0_36 = arith.constant 0 : index
    %c0_37 = arith.constant 0 : index
    %c0_38 = arith.constant 0 : index
    %c0_39 = arith.constant 0 : index
    %44 = vector.load %arg10[%c0_36, %c0_37, %c0_38, %c0_39] : memref<2x2x1x16xf32, #tpu.memory_space<vmem>>, vector<1x1x1x16xf32>
    %45 = vector.shape_cast %44 : vector<1x1x1x16xf32> to vector<1x16xf32>
    %46 = vector.broadcast %45 : vector<1x16xf32> to vector<16x16xf32>
    %47 = arith.addf %43, %46 : vector<16x16xf32>
    %48 = vector.shape_cast %33 : vector<16x16xf32> to vector<2x8x16xf32>
    %49 = vector.shape_cast %40 : vector<16x16xf32> to vector<2x8x16xf32>
    %50 = vector.shape_cast %47 : vector<16x16xf32> to vector<2x8x16xf32>
    "tpu.trace_start"() <{level = 10 : i32, message = "bqd,bkd->bqk"}> : () -> ()
    %cst_40 = arith.constant dense<0.000000e+00> : vector<2x8x8xf32>
    %51 = tpu.matmul %48, %49, %cst_40 {dimension_numbers = #tpu.dot_dimension_numbers<[2], [2], [1], [1], [0, 0, 0, 1, 1, 1], [0], [0]>} : vector<2x8x16xf32>, vector<2x8x16xf32>, vector<2x8x8xf32> -> vector<2x8x8xf32>
    "tpu.trace_stop"() : () -> ()
    %cst_41 = arith.constant 2.500000e-01 : f32
    %52 = vector.broadcast %cst_41 : f32 to vector<2x8x8xf32>
    %53 = arith.mulf %51, %52 : vector<2x8x8xf32>
    %54 = vector.broadcast %25 : vector<2x1x8xf32> to vector<2x8x8xf32>
    %55 = arith.addf %53, %54 : vector<2x8x8xf32>
    %cst_42 = arith.constant dense<0xFF800000> : vector<2x8xf32>
    %56 = vector.multi_reduction <maximumf>, %55, %cst_42 [2] : vector<2x8x8xf32> to vector<2x8xf32>
    %57 = vector.shape_cast %56 : vector<2x8xf32> to vector<2x8x1xf32>
    %58 = vector.broadcast %57 : vector<2x8x1xf32> to vector<2x8x8xf32>
    %59 = arith.subf %55, %58 : vector<2x8x8xf32>
    %60 = math.exp %59 : vector<2x8x8xf32>
    %cst_43 = arith.constant dense<0.000000e+00> : vector<2x8xf32>
    %61 = vector.multi_reduction <add>, %60, %cst_43 [2] : vector<2x8x8xf32> to vector<2x8xf32>
    %62 = vector.shape_cast %61 : vector<2x8xf32> to vector<2x8x1xf32>
    %63 = tpu.reciprocal %62 {approx = true} : vector<2x8x1xf32> -> vector<2x8x1xf32>
    %64 = vector.broadcast %63 : vector<2x8x1xf32> to vector<2x8x8xf32>
    %65 = arith.mulf %60, %64 : vector<2x8x8xf32>
    "tpu.trace_start"() <{level = 10 : i32, message = "bqk,bkd->bqd"}> : () -> ()
    %cst_44 = arith.constant dense<0.000000e+00> : vector<2x8x16xf32>
    %66 = tpu.matmul %65, %50, %cst_44 {dimension_numbers = #tpu.dot_dimension_numbers<[2], [1], [1], [2], [0, 0, 0, 1, 1, 2], [0], [0]>} : vector<2x8x8xf32>, vector<2x8x16xf32>, vector<2x8x16xf32> -> vector<2x8x16xf32>
    "tpu.trace_stop"() : () -> ()
    %67 = vector.shape_cast %66 : vector<2x8x16xf32> to vector<16x16xf32>
    %c0_45 = arith.constant 0 : index
    %c0_46 = arith.constant 0 : index
    %c0_47 = arith.constant 0 : index
    %c0_48 = arith.constant 0 : index
    %68 = vector.load %arg11[%c0_45, %c0_46, %c0_47, %c0_48] : memref<2x2x16x32xf32, #tpu.memory_space<vmem>>, vector<1x1x16x32xf32>
    %69 = vector.shape_cast %68 : vector<1x1x16x32xf32> to vector<16x32xf32>
    %cst_49 = arith.constant dense<0.000000e+00> : vector<16x32xf32>
    %70 = tpu.matmul %67, %69, %cst_49 {dimension_numbers = #tpu.dot_dimension_numbers<[1], [0], [0], [1], [0, 0, 1, 1], [], []>} : vector<16x16xf32>, vector<16x32xf32>, vector<16x32xf32> -> vector<16x32xf32>
    %71 = arith.addf %26, %70 : vector<16x32xf32>
    %c0_50 = arith.constant 0 : index
    %c1 = arith.constant 1 : index
    %c0_51 = arith.constant 0 : index
    %c0_52 = arith.constant 0 : index
    %72 = vector.load %arg5[%c0_50, %c1, %c0_51, %c0_52] : memref<2x2x32x16xf32, #tpu.memory_space<vmem>>, vector<1x1x32x16xf32>
    %73 = vector.shape_cast %72 : vector<1x1x32x16xf32> to vector<32x16xf32>
    %cst_53 = arith.constant dense<0.000000e+00> : vector<16x16xf32>
    %74 = tpu.matmul %24, %73, %cst_53 {dimension_numbers = #tpu.dot_dimension_numbers<[1], [0], [0], [1], [0, 0, 1, 1], [], []>} : vector<16x32xf32>, vector<32x16xf32>, vector<16x16xf32> -> vector<16x16xf32>
    %c0_54 = arith.constant 0 : index
    %c1_55 = arith.constant 1 : index
    %c0_56 = arith.constant 0 : index
    %c0_57 = arith.constant 0 : index
    %75 = vector.load %arg6[%c0_54, %c1_55, %c0_56, %c0_57] : memref<2x2x1x16xf32, #tpu.memory_space<vmem>>, vector<1x1x1x16xf32>
    %76 = vector.shape_cast %75 : vector<1x1x1x16xf32> to vector<1x16xf32>
    %77 = vector.broadcast %76 : vector<1x16xf32> to vector<16x16xf32>
    %78 = arith.addf %74, %77 : vector<16x16xf32>
    %c0_58 = arith.constant 0 : index
    %c1_59 = arith.constant 1 : index
    %c0_60 = arith.constant 0 : index
    %c0_61 = arith.constant 0 : index
    %79 = vector.load %arg7[%c0_58, %c1_59, %c0_60, %c0_61] : memref<2x2x32x16xf32, #tpu.memory_space<vmem>>, vector<1x1x32x16xf32>
    %80 = vector.shape_cast %79 : vector<1x1x32x16xf32> to vector<32x16xf32>
    %cst_62 = arith.constant dense<0.000000e+00> : vector<16x16xf32>
    %81 = tpu.matmul %24, %80, %cst_62 {dimension_numbers = #tpu.dot_dimension_numbers<[1], [0], [0], [1], [0, 0, 1, 1], [], []>} : vector<16x32xf32>, vector<32x16xf32>, vector<16x16xf32> -> vector<16x16xf32>
    %c0_63 = arith.constant 0 : index
    %c1_64 = arith.constant 1 : index
    %c0_65 = arith.constant 0 : index
    %c0_66 = arith.constant 0 : index
    %82 = vector.load %arg8[%c0_63, %c1_64, %c0_65, %c0_66] : memref<2x2x1x16xf32, #tpu.memory_space<vmem>>, vector<1x1x1x16xf32>
    %83 = vector.shape_cast %82 : vector<1x1x1x16xf32> to vector<1x16xf32>
    %84 = vector.broadcast %83 : vector<1x16xf32> to vector<16x16xf32>
    %85 = arith.addf %81, %84 : vector<16x16xf32>
    %c0_67 = arith.constant 0 : index
    %c1_68 = arith.constant 1 : index
    %c0_69 = arith.constant 0 : index
    %c0_70 = arith.constant 0 : index
    %86 = vector.load %arg9[%c0_67, %c1_68, %c0_69, %c0_70] : memref<2x2x32x16xf32, #tpu.memory_space<vmem>>, vector<1x1x32x16xf32>
    %87 = vector.shape_cast %86 : vector<1x1x32x16xf32> to vector<32x16xf32>
    %cst_71 = arith.constant dense<0.000000e+00> : vector<16x16xf32>
    %88 = tpu.matmul %24, %87, %cst_71 {dimension_numbers = #tpu.dot_dimension_numbers<[1], [0], [0], [1], [0, 0, 1, 1], [], []>} : vector<16x32xf32>, vector<32x16xf32>, vector<16x16xf32> -> vector<16x16xf32>
    %c0_72 = arith.constant 0 : index
    %c1_73 = arith.constant 1 : index
    %c0_74 = arith.constant 0 : index
    %c0_75 = arith.constant 0 : index
    %89 = vector.load %arg10[%c0_72, %c1_73, %c0_74, %c0_75] : memref<2x2x1x16xf32, #tpu.memory_space<vmem>>, vector<1x1x1x16xf32>
    %90 = vector.shape_cast %89 : vector<1x1x1x16xf32> to vector<1x16xf32>
    %91 = vector.broadcast %90 : vector<1x16xf32> to vector<16x16xf32>
    %92 = arith.addf %88, %91 : vector<16x16xf32>
    %93 = vector.shape_cast %78 : vector<16x16xf32> to vector<2x8x16xf32>
    %94 = vector.shape_cast %85 : vector<16x16xf32> to vector<2x8x16xf32>
    %95 = vector.shape_cast %92 : vector<16x16xf32> to vector<2x8x16xf32>
    "tpu.trace_start"() <{level = 10 : i32, message = "bqd,bkd->bqk"}> : () -> ()
    %cst_76 = arith.constant dense<0.000000e+00> : vector<2x8x8xf32>
    %96 = tpu.matmul %93, %94, %cst_76 {dimension_numbers = #tpu.dot_dimension_numbers<[2], [2], [1], [1], [0, 0, 0, 1, 1, 1], [0], [0]>} : vector<2x8x16xf32>, vector<2x8x16xf32>, vector<2x8x8xf32> -> vector<2x8x8xf32>
    "tpu.trace_stop"() : () -> ()
    %cst_77 = arith.constant 2.500000e-01 : f32
    %97 = vector.broadcast %cst_77 : f32 to vector<2x8x8xf32>
    %98 = arith.mulf %96, %97 : vector<2x8x8xf32>
    %99 = vector.broadcast %25 : vector<2x1x8xf32> to vector<2x8x8xf32>
    %100 = arith.addf %98, %99 : vector<2x8x8xf32>
    %cst_78 = arith.constant dense<0xFF800000> : vector<2x8xf32>
    %101 = vector.multi_reduction <maximumf>, %100, %cst_78 [2] : vector<2x8x8xf32> to vector<2x8xf32>
    %102 = vector.shape_cast %101 : vector<2x8xf32> to vector<2x8x1xf32>
    %103 = vector.broadcast %102 : vector<2x8x1xf32> to vector<2x8x8xf32>
    %104 = arith.subf %100, %103 : vector<2x8x8xf32>
    %105 = math.exp %104 : vector<2x8x8xf32>
    %cst_79 = arith.constant dense<0.000000e+00> : vector<2x8xf32>
    %106 = vector.multi_reduction <add>, %105, %cst_79 [2] : vector<2x8x8xf32> to vector<2x8xf32>
    %107 = vector.shape_cast %106 : vector<2x8xf32> to vector<2x8x1xf32>
    %108 = tpu.reciprocal %107 {approx = true} : vector<2x8x1xf32> -> vector<2x8x1xf32>
    %109 = vector.broadcast %108 : vector<2x8x1xf32> to vector<2x8x8xf32>
    %110 = arith.mulf %105, %109 : vector<2x8x8xf32>
    "tpu.trace_start"() <{level = 10 : i32, message = "bqk,bkd->bqd"}> : () -> ()
    %cst_80 = arith.constant dense<0.000000e+00> : vector<2x8x16xf32>
    %111 = tpu.matmul %110, %95, %cst_80 {dimension_numbers = #tpu.dot_dimension_numbers<[2], [1], [1], [2], [0, 0, 0, 1, 1, 2], [0], [0]>} : vector<2x8x8xf32>, vector<2x8x16xf32>, vector<2x8x16xf32> -> vector<2x8x16xf32>
    "tpu.trace_stop"() : () -> ()
    %112 = vector.shape_cast %111 : vector<2x8x16xf32> to vector<16x16xf32>
    %c0_81 = arith.constant 0 : index
    %c1_82 = arith.constant 1 : index
    %c0_83 = arith.constant 0 : index
    %c0_84 = arith.constant 0 : index
    %113 = vector.load %arg11[%c0_81, %c1_82, %c0_83, %c0_84] : memref<2x2x16x32xf32, #tpu.memory_space<vmem>>, vector<1x1x16x32xf32>
    %114 = vector.shape_cast %113 : vector<1x1x16x32xf32> to vector<16x32xf32>
    %cst_85 = arith.constant dense<0.000000e+00> : vector<16x32xf32>
    %115 = tpu.matmul %112, %114, %cst_85 {dimension_numbers = #tpu.dot_dimension_numbers<[1], [0], [0], [1], [0, 0, 1, 1], [], []>} : vector<16x16xf32>, vector<16x32xf32>, vector<16x32xf32> -> vector<16x32xf32>
    %116 = arith.addf %71, %115 : vector<16x32xf32>
    %c0_86 = arith.constant 0 : index
    %c0_87 = arith.constant 0 : index
    %c0_88 = arith.constant 0 : index
    %117 = vector.load %arg12[%c0_86, %c0_87, %c0_88] : memref<2x1x32xf32, #tpu.memory_space<vmem>>, vector<1x1x32xf32>
    %118 = vector.shape_cast %117 : vector<1x1x32xf32> to vector<1x32xf32>
    %119 = vector.broadcast %118 : vector<1x32xf32> to vector<16x32xf32>
    %120 = arith.addf %116, %119 : vector<16x32xf32>
    %121 = arith.addf %24, %120 : vector<16x32xf32>
    %c0_89 = arith.constant 0 : index
    %c0_90 = arith.constant 0 : index
    %c0_91 = arith.constant 0 : index
    %122 = vector.load %arg13[%c0_89, %c0_90, %c0_91] : memref<2x1x32xf32, #tpu.memory_space<vmem>>, vector<1x1x32xf32>
    %123 = vector.shape_cast %122 : vector<1x1x32xf32> to vector<1x32xf32>
    %c0_92 = arith.constant 0 : index
    %c0_93 = arith.constant 0 : index
    %c0_94 = arith.constant 0 : index
    %124 = vector.load %arg14[%c0_92, %c0_93, %c0_94] : memref<2x1x32xf32, #tpu.memory_space<vmem>>, vector<1x1x32xf32>
    %125 = vector.shape_cast %124 : vector<1x1x32xf32> to vector<1x32xf32>
    %cst_95 = arith.constant dense<0.000000e+00> : vector<16xf32>
    %126 = vector.multi_reduction <add>, %121, %cst_95 [1] : vector<16x32xf32> to vector<16xf32>
    %127 = vector.shape_cast %126 : vector<16xf32> to vector<16x1xf32>
    %cst_96 = arith.constant 3.200000e+01 : f32
    %128 = vector.broadcast %cst_96 : f32 to vector<16x1xf32>
    %129 = arith.divf %127, %128 : vector<16x1xf32>
    %130 = vector.broadcast %129 : vector<16x1xf32> to vector<16x32xf32>
    %131 = arith.subf %121, %130 : vector<16x32xf32>
    %132 = arith.mulf %131, %131 : vector<16x32xf32>
    %cst_97 = arith.constant dense<0.000000e+00> : vector<16xf32>
    %133 = vector.multi_reduction <add>, %132, %cst_97 [1] : vector<16x32xf32> to vector<16xf32>
    %134 = vector.shape_cast %133 : vector<16xf32> to vector<16x1xf32>
    %cst_98 = arith.constant 3.200000e+01 : f32
    %135 = vector.broadcast %cst_98 : f32 to vector<16x1xf32>
    %136 = arith.divf %134, %135 : vector<16x1xf32>
    %137 = vector.broadcast %129 : vector<16x1xf32> to vector<16x32xf32>
    %138 = arith.subf %121, %137 : vector<16x32xf32>
    %cst_99 = arith.constant 9.99999996E-13 : f32
    %139 = vector.broadcast %cst_99 : f32 to vector<16x1xf32>
    %140 = arith.addf %136, %139 : vector<16x1xf32>
    %141 = math.rsqrt %140 : vector<16x1xf32>
    %142 = vector.broadcast %141 : vector<16x1xf32> to vector<16x32xf32>
    %143 = arith.mulf %138, %142 : vector<16x32xf32>
    %144 = vector.broadcast %123 : vector<1x32xf32> to vector<16x32xf32>
    %145 = arith.mulf %143, %144 : vector<16x32xf32>
    %146 = vector.broadcast %125 : vector<1x32xf32> to vector<16x32xf32>
    %147 = arith.addf %145, %146 : vector<16x32xf32>
    %c0_100 = arith.constant 0 : index
    %c0_101 = arith.constant 0 : index
    %c0_102 = arith.constant 0 : index
    %148 = vector.load %arg15[%c0_100, %c0_101, %c0_102] : memref<2x32x64xf32, #tpu.memory_space<vmem>>, vector<1x32x64xf32>
    %149 = vector.shape_cast %148 : vector<1x32x64xf32> to vector<32x64xf32>
    %cst_103 = arith.constant dense<0.000000e+00> : vector<16x64xf32>
    %150 = tpu.matmul %147, %149, %cst_103 {dimension_numbers = #tpu.dot_dimension_numbers<[1], [0], [0], [1], [0, 0, 1, 1], [], []>} : vector<16x32xf32>, vector<32x64xf32>, vector<16x64xf32> -> vector<16x64xf32>
    %c0_104 = arith.constant 0 : index
    %c0_105 = arith.constant 0 : index
    %c0_106 = arith.constant 0 : index
    %151 = vector.load %arg16[%c0_104, %c0_105, %c0_106] : memref<2x1x64xf32, #tpu.memory_space<vmem>>, vector<1x1x64xf32>
    %152 = vector.shape_cast %151 : vector<1x1x64xf32> to vector<1x64xf32>
    %153 = vector.broadcast %152 : vector<1x64xf32> to vector<16x64xf32>
    %154 = arith.addf %150, %153 : vector<16x64xf32>
    %cst_107 = arith.constant 5.000000e-01 : f32
    %155 = vector.broadcast %cst_107 : f32 to vector<16x64xf32>
    %156 = arith.mulf %155, %154 : vector<16x64xf32>
    %cst_108 = arith.constant 4.471500e-02 : f32
    %157 = vector.broadcast %cst_108 : f32 to vector<16x64xf32>
    %158 = arith.mulf %157, %154 : vector<16x64xf32>
    %159 = arith.mulf %158, %154 : vector<16x64xf32>
    %160 = arith.mulf %159, %154 : vector<16x64xf32>
    %161 = arith.addf %154, %160 : vector<16x64xf32>
    %cst_109 = arith.constant 0.797884583 : f32
    %162 = vector.broadcast %cst_109 : f32 to vector<16x64xf32>
    %163 = arith.mulf %162, %161 : vector<16x64xf32>
    %164 = math.tanh %163 : vector<16x64xf32>
    %cst_110 = arith.constant 1.000000e+00 : f32
    %165 = vector.broadcast %cst_110 : f32 to vector<16x64xf32>
    %166 = arith.addf %165, %164 : vector<16x64xf32>
    %167 = arith.mulf %156, %166 : vector<16x64xf32>
    %c0_111 = arith.constant 0 : index
    %c0_112 = arith.constant 0 : index
    %c0_113 = arith.constant 0 : index
    %168 = vector.load %arg17[%c0_111, %c0_112, %c0_113] : memref<2x64x32xf32, #tpu.memory_space<vmem>>, vector<1x64x32xf32>
    %169 = vector.shape_cast %168 : vector<1x64x32xf32> to vector<64x32xf32>
    %cst_114 = arith.constant dense<0.000000e+00> : vector<16x32xf32>
    %170 = tpu.matmul %167, %169, %cst_114 {dimension_numbers = #tpu.dot_dimension_numbers<[1], [0], [0], [1], [0, 0, 1, 1], [], []>} : vector<16x64xf32>, vector<64x32xf32>, vector<16x32xf32> -> vector<16x32xf32>
    %c0_115 = arith.constant 0 : index
    %c0_116 = arith.constant 0 : index
    %c0_117 = arith.constant 0 : index
    %171 = vector.load %arg18[%c0_115, %c0_116, %c0_117] : memref<2x1x32xf32, #tpu.memory_space<vmem>>, vector<1x1x32xf32>
    %172 = vector.shape_cast %171 : vector<1x1x32xf32> to vector<1x32xf32>
    %173 = vector.broadcast %172 : vector<1x32xf32> to vector<16x32xf32>
    %174 = arith.addf %170, %173 : vector<16x32xf32>
    %175 = arith.addf %147, %174 : vector<16x32xf32>
    %c0_118 = arith.constant 0 : index
    %c0_119 = arith.constant 0 : index
    %c0_120 = arith.constant 0 : index
    %176 = vector.load %arg19[%c0_118, %c0_119, %c0_120] : memref<2x1x32xf32, #tpu.memory_space<vmem>>, vector<1x1x32xf32>
    %177 = vector.shape_cast %176 : vector<1x1x32xf32> to vector<1x32xf32>
    %c0_121 = arith.constant 0 : index
    %c0_122 = arith.constant 0 : index
    %c0_123 = arith.constant 0 : index
    %178 = vector.load %arg20[%c0_121, %c0_122, %c0_123] : memref<2x1x32xf32, #tpu.memory_space<vmem>>, vector<1x1x32xf32>
    %179 = vector.shape_cast %178 : vector<1x1x32xf32> to vector<1x32xf32>
    %cst_124 = arith.constant dense<0.000000e+00> : vector<16xf32>
    %180 = vector.multi_reduction <add>, %175, %cst_124 [1] : vector<16x32xf32> to vector<16xf32>
    %181 = vector.shape_cast %180 : vector<16xf32> to vector<16x1xf32>
    %cst_125 = arith.constant 3.200000e+01 : f32
    %182 = vector.broadcast %cst_125 : f32 to vector<16x1xf32>
    %183 = arith.divf %181, %182 : vector<16x1xf32>
    %184 = vector.broadcast %183 : vector<16x1xf32> to vector<16x32xf32>
    %185 = arith.subf %175, %184 : vector<16x32xf32>
    %186 = arith.mulf %185, %185 : vector<16x32xf32>
    %cst_126 = arith.constant dense<0.000000e+00> : vector<16xf32>
    %187 = vector.multi_reduction <add>, %186, %cst_126 [1] : vector<16x32xf32> to vector<16xf32>
    %188 = vector.shape_cast %187 : vector<16xf32> to vector<16x1xf32>
    %cst_127 = arith.constant 3.200000e+01 : f32
    %189 = vector.broadcast %cst_127 : f32 to vector<16x1xf32>
    %190 = arith.divf %188, %189 : vector<16x1xf32>
    %191 = vector.broadcast %183 : vector<16x1xf32> to vector<16x32xf32>
    %192 = arith.subf %175, %191 : vector<16x32xf32>
    %cst_128 = arith.constant 9.99999996E-13 : f32
    %193 = vector.broadcast %cst_128 : f32 to vector<16x1xf32>
    %194 = arith.addf %190, %193 : vector<16x1xf32>
    %195 = math.rsqrt %194 : vector<16x1xf32>
    %196 = vector.broadcast %195 : vector<16x1xf32> to vector<16x32xf32>
    %197 = arith.mulf %192, %196 : vector<16x32xf32>
    %198 = vector.broadcast %177 : vector<1x32xf32> to vector<16x32xf32>
    %199 = arith.mulf %197, %198 : vector<16x32xf32>
    %200 = vector.broadcast %179 : vector<1x32xf32> to vector<16x32xf32>
    %201 = arith.addf %199, %200 : vector<16x32xf32>
    %cst_129 = arith.constant 0.000000e+00 : f32
    %202 = vector.broadcast %cst_129 : f32 to vector<16x32xf32>
    %c1_130 = arith.constant 1 : index
    %c0_131 = arith.constant 0 : index
    %c0_132 = arith.constant 0 : index
    %c0_133 = arith.constant 0 : index
    %203 = vector.load %arg5[%c1_130, %c0_131, %c0_132, %c0_133] : memref<2x2x32x16xf32, #tpu.memory_space<vmem>>, vector<1x1x32x16xf32>
    %204 = vector.shape_cast %203 : vector<1x1x32x16xf32> to vector<32x16xf32>
    %cst_134 = arith.constant dense<0.000000e+00> : vector<16x16xf32>
    %205 = tpu.matmul %201, %204, %cst_134 {dimension_numbers = #tpu.dot_dimension_numbers<[1], [0], [0], [1], [0, 0, 1, 1], [], []>} : vector<16x32xf32>, vector<32x16xf32>, vector<16x16xf32> -> vector<16x16xf32>
    %c1_135 = arith.constant 1 : index
    %c0_136 = arith.constant 0 : index
    %c0_137 = arith.constant 0 : index
    %c0_138 = arith.constant 0 : index
    %206 = vector.load %arg6[%c1_135, %c0_136, %c0_137, %c0_138] : memref<2x2x1x16xf32, #tpu.memory_space<vmem>>, vector<1x1x1x16xf32>
    %207 = vector.shape_cast %206 : vector<1x1x1x16xf32> to vector<1x16xf32>
    %208 = vector.broadcast %207 : vector<1x16xf32> to vector<16x16xf32>
    %209 = arith.addf %205, %208 : vector<16x16xf32>
    %c1_139 = arith.constant 1 : index
    %c0_140 = arith.constant 0 : index
    %c0_141 = arith.constant 0 : index
    %c0_142 = arith.constant 0 : index
    %210 = vector.load %arg7[%c1_139, %c0_140, %c0_141, %c0_142] : memref<2x2x32x16xf32, #tpu.memory_space<vmem>>, vector<1x1x32x16xf32>
    %211 = vector.shape_cast %210 : vector<1x1x32x16xf32> to vector<32x16xf32>
    %cst_143 = arith.constant dense<0.000000e+00> : vector<16x16xf32>
    %212 = tpu.matmul %201, %211, %cst_143 {dimension_numbers = #tpu.dot_dimension_numbers<[1], [0], [0], [1], [0, 0, 1, 1], [], []>} : vector<16x32xf32>, vector<32x16xf32>, vector<16x16xf32> -> vector<16x16xf32>
    %c1_144 = arith.constant 1 : index
    %c0_145 = arith.constant 0 : index
    %c0_146 = arith.constant 0 : index
    %c0_147 = arith.constant 0 : index
    %213 = vector.load %arg8[%c1_144, %c0_145, %c0_146, %c0_147] : memref<2x2x1x16xf32, #tpu.memory_space<vmem>>, vector<1x1x1x16xf32>
    %214 = vector.shape_cast %213 : vector<1x1x1x16xf32> to vector<1x16xf32>
    %215 = vector.broadcast %214 : vector<1x16xf32> to vector<16x16xf32>
    %216 = arith.addf %212, %215 : vector<16x16xf32>
    %c1_148 = arith.constant 1 : index
    %c0_149 = arith.constant 0 : index
    %c0_150 = arith.constant 0 : index
    %c0_151 = arith.constant 0 : index
    %217 = vector.load %arg9[%c1_148, %c0_149, %c0_150, %c0_151] : memref<2x2x32x16xf32, #tpu.memory_space<vmem>>, vector<1x1x32x16xf32>
    %218 = vector.shape_cast %217 : vector<1x1x32x16xf32> to vector<32x16xf32>
    %cst_152 = arith.constant dense<0.000000e+00> : vector<16x16xf32>
    %219 = tpu.matmul %201, %218, %cst_152 {dimension_numbers = #tpu.dot_dimension_numbers<[1], [0], [0], [1], [0, 0, 1, 1], [], []>} : vector<16x32xf32>, vector<32x16xf32>, vector<16x16xf32> -> vector<16x16xf32>
    %c1_153 = arith.constant 1 : index
    %c0_154 = arith.constant 0 : index
    %c0_155 = arith.constant 0 : index
    %c0_156 = arith.constant 0 : index
    %220 = vector.load %arg10[%c1_153, %c0_154, %c0_155, %c0_156] : memref<2x2x1x16xf32, #tpu.memory_space<vmem>>, vector<1x1x1x16xf32>
    %221 = vector.shape_cast %220 : vector<1x1x1x16xf32> to vector<1x16xf32>
    %222 = vector.broadcast %221 : vector<1x16xf32> to vector<16x16xf32>
    %223 = arith.addf %219, %222 : vector<16x16xf32>
    %224 = vector.shape_cast %209 : vector<16x16xf32> to vector<2x8x16xf32>
    %225 = vector.shape_cast %216 : vector<16x16xf32> to vector<2x8x16xf32>
    %226 = vector.shape_cast %223 : vector<16x16xf32> to vector<2x8x16xf32>
    "tpu.trace_start"() <{level = 10 : i32, message = "bqd,bkd->bqk"}> : () -> ()
    %cst_157 = arith.constant dense<0.000000e+00> : vector<2x8x8xf32>
    %227 = tpu.matmul %224, %225, %cst_157 {dimension_numbers = #tpu.dot_dimension_numbers<[2], [2], [1], [1], [0, 0, 0, 1, 1, 1], [0], [0]>} : vector<2x8x16xf32>, vector<2x8x16xf32>, vector<2x8x8xf32> -> vector<2x8x8xf32>
    "tpu.trace_stop"() : () -> ()
    %cst_158 = arith.constant 2.500000e-01 : f32
    %228 = vector.broadcast %cst_158 : f32 to vector<2x8x8xf32>
    %229 = arith.mulf %227, %228 : vector<2x8x8xf32>
    %230 = vector.broadcast %25 : vector<2x1x8xf32> to vector<2x8x8xf32>
    %231 = arith.addf %229, %230 : vector<2x8x8xf32>
    %cst_159 = arith.constant dense<0xFF800000> : vector<2x8xf32>
    %232 = vector.multi_reduction <maximumf>, %231, %cst_159 [2] : vector<2x8x8xf32> to vector<2x8xf32>
    %233 = vector.shape_cast %232 : vector<2x8xf32> to vector<2x8x1xf32>
    %234 = vector.broadcast %233 : vector<2x8x1xf32> to vector<2x8x8xf32>
    %235 = arith.subf %231, %234 : vector<2x8x8xf32>
    %236 = math.exp %235 : vector<2x8x8xf32>
    %cst_160 = arith.constant dense<0.000000e+00> : vector<2x8xf32>
    %237 = vector.multi_reduction <add>, %236, %cst_160 [2] : vector<2x8x8xf32> to vector<2x8xf32>
    %238 = vector.shape_cast %237 : vector<2x8xf32> to vector<2x8x1xf32>
    %239 = tpu.reciprocal %238 {approx = true} : vector<2x8x1xf32> -> vector<2x8x1xf32>
    %240 = vector.broadcast %239 : vector<2x8x1xf32> to vector<2x8x8xf32>
    %241 = arith.mulf %236, %240 : vector<2x8x8xf32>
    "tpu.trace_start"() <{level = 10 : i32, message = "bqk,bkd->bqd"}> : () -> ()
    %cst_161 = arith.constant dense<0.000000e+00> : vector<2x8x16xf32>
    %242 = tpu.matmul %241, %226, %cst_161 {dimension_numbers = #tpu.dot_dimension_numbers<[2], [1], [1], [2], [0, 0, 0, 1, 1, 2], [0], [0]>} : vector<2x8x8xf32>, vector<2x8x16xf32>, vector<2x8x16xf32> -> vector<2x8x16xf32>
    "tpu.trace_stop"() : () -> ()
    %243 = vector.shape_cast %242 : vector<2x8x16xf32> to vector<16x16xf32>
    %c1_162 = arith.constant 1 : index
    %c0_163 = arith.constant 0 : index
    %c0_164 = arith.constant 0 : index
    %c0_165 = arith.constant 0 : index
    %244 = vector.load %arg11[%c1_162, %c0_163, %c0_164, %c0_165] : memref<2x2x16x32xf32, #tpu.memory_space<vmem>>, vector<1x1x16x32xf32>
    %245 = vector.shape_cast %244 : vector<1x1x16x32xf32> to vector<16x32xf32>
    %cst_166 = arith.constant dense<0.000000e+00> : vector<16x32xf32>
    %246 = tpu.matmul %243, %245, %cst_166 {dimension_numbers = #tpu.dot_dimension_numbers<[1], [0], [0], [1], [0, 0, 1, 1], [], []>} : vector<16x16xf32>, vector<16x32xf32>, vector<16x32xf32> -> vector<16x32xf32>
    %247 = arith.addf %202, %246 : vector<16x32xf32>
    %c1_167 = arith.constant 1 : index
    %c1_168 = arith.constant 1 : index
    %c0_169 = arith.constant 0 : index
    %c0_170 = arith.constant 0 : index
    %248 = vector.load %arg5[%c1_167, %c1_168, %c0_169, %c0_170] : memref<2x2x32x16xf32, #tpu.memory_space<vmem>>, vector<1x1x32x16xf32>
    %249 = vector.shape_cast %248 : vector<1x1x32x16xf32> to vector<32x16xf32>
    %cst_171 = arith.constant dense<0.000000e+00> : vector<16x16xf32>
    %250 = tpu.matmul %201, %249, %cst_171 {dimension_numbers = #tpu.dot_dimension_numbers<[1], [0], [0], [1], [0, 0, 1, 1], [], []>} : vector<16x32xf32>, vector<32x16xf32>, vector<16x16xf32> -> vector<16x16xf32>
    %c1_172 = arith.constant 1 : index
    %c1_173 = arith.constant 1 : index
    %c0_174 = arith.constant 0 : index
    %c0_175 = arith.constant 0 : index
    %251 = vector.load %arg6[%c1_172, %c1_173, %c0_174, %c0_175] : memref<2x2x1x16xf32, #tpu.memory_space<vmem>>, vector<1x1x1x16xf32>
    %252 = vector.shape_cast %251 : vector<1x1x1x16xf32> to vector<1x16xf32>
    %253 = vector.broadcast %252 : vector<1x16xf32> to vector<16x16xf32>
    %254 = arith.addf %250, %253 : vector<16x16xf32>
    %c1_176 = arith.constant 1 : index
    %c1_177 = arith.constant 1 : index
    %c0_178 = arith.constant 0 : index
    %c0_179 = arith.constant 0 : index
    %255 = vector.load %arg7[%c1_176, %c1_177, %c0_178, %c0_179] : memref<2x2x32x16xf32, #tpu.memory_space<vmem>>, vector<1x1x32x16xf32>
    %256 = vector.shape_cast %255 : vector<1x1x32x16xf32> to vector<32x16xf32>
    %cst_180 = arith.constant dense<0.000000e+00> : vector<16x16xf32>
    %257 = tpu.matmul %201, %256, %cst_180 {dimension_numbers = #tpu.dot_dimension_numbers<[1], [0], [0], [1], [0, 0, 1, 1], [], []>} : vector<16x32xf32>, vector<32x16xf32>, vector<16x16xf32> -> vector<16x16xf32>
    %c1_181 = arith.constant 1 : index
    %c1_182 = arith.constant 1 : index
    %c0_183 = arith.constant 0 : index
    %c0_184 = arith.constant 0 : index
    %258 = vector.load %arg8[%c1_181, %c1_182, %c0_183, %c0_184] : memref<2x2x1x16xf32, #tpu.memory_space<vmem>>, vector<1x1x1x16xf32>
    %259 = vector.shape_cast %258 : vector<1x1x1x16xf32> to vector<1x16xf32>
    %260 = vector.broadcast %259 : vector<1x16xf32> to vector<16x16xf32>
    %261 = arith.addf %257, %260 : vector<16x16xf32>
    %c1_185 = arith.constant 1 : index
    %c1_186 = arith.constant 1 : index
    %c0_187 = arith.constant 0 : index
    %c0_188 = arith.constant 0 : index
    %262 = vector.load %arg9[%c1_185, %c1_186, %c0_187, %c0_188] : memref<2x2x32x16xf32, #tpu.memory_space<vmem>>, vector<1x1x32x16xf32>
    %263 = vector.shape_cast %262 : vector<1x1x32x16xf32> to vector<32x16xf32>
    %cst_189 = arith.constant dense<0.000000e+00> : vector<16x16xf32>
    %264 = tpu.matmul %201, %263, %cst_189 {dimension_numbers = #tpu.dot_dimension_numbers<[1], [0], [0], [1], [0, 0, 1, 1], [], []>} : vector<16x32xf32>, vector<32x16xf32>, vector<16x16xf32> -> vector<16x16xf32>
    %c1_190 = arith.constant 1 : index
    %c1_191 = arith.constant 1 : index
    %c0_192 = arith.constant 0 : index
    %c0_193 = arith.constant 0 : index
    %265 = vector.load %arg10[%c1_190, %c1_191, %c0_192, %c0_193] : memref<2x2x1x16xf32, #tpu.memory_space<vmem>>, vector<1x1x1x16xf32>
    %266 = vector.shape_cast %265 : vector<1x1x1x16xf32> to vector<1x16xf32>
    %267 = vector.broadcast %266 : vector<1x16xf32> to vector<16x16xf32>
    %268 = arith.addf %264, %267 : vector<16x16xf32>
    %269 = vector.shape_cast %254 : vector<16x16xf32> to vector<2x8x16xf32>
    %270 = vector.shape_cast %261 : vector<16x16xf32> to vector<2x8x16xf32>
    %271 = vector.shape_cast %268 : vector<16x16xf32> to vector<2x8x16xf32>
    "tpu.trace_start"() <{level = 10 : i32, message = "bqd,bkd->bqk"}> : () -> ()
    %cst_194 = arith.constant dense<0.000000e+00> : vector<2x8x8xf32>
    %272 = tpu.matmul %269, %270, %cst_194 {dimension_numbers = #tpu.dot_dimension_numbers<[2], [2], [1], [1], [0, 0, 0, 1, 1, 1], [0], [0]>} : vector<2x8x16xf32>, vector<2x8x16xf32>, vector<2x8x8xf32> -> vector<2x8x8xf32>
    "tpu.trace_stop"() : () -> ()
    %cst_195 = arith.constant 2.500000e-01 : f32
    %273 = vector.broadcast %cst_195 : f32 to vector<2x8x8xf32>
    %274 = arith.mulf %272, %273 : vector<2x8x8xf32>
    %275 = vector.broadcast %25 : vector<2x1x8xf32> to vector<2x8x8xf32>
    %276 = arith.addf %274, %275 : vector<2x8x8xf32>
    %cst_196 = arith.constant dense<0xFF800000> : vector<2x8xf32>
    %277 = vector.multi_reduction <maximumf>, %276, %cst_196 [2] : vector<2x8x8xf32> to vector<2x8xf32>
    %278 = vector.shape_cast %277 : vector<2x8xf32> to vector<2x8x1xf32>
    %279 = vector.broadcast %278 : vector<2x8x1xf32> to vector<2x8x8xf32>
    %280 = arith.subf %276, %279 : vector<2x8x8xf32>
    %281 = math.exp %280 : vector<2x8x8xf32>
    %cst_197 = arith.constant dense<0.000000e+00> : vector<2x8xf32>
    %282 = vector.multi_reduction <add>, %281, %cst_197 [2] : vector<2x8x8xf32> to vector<2x8xf32>
    %283 = vector.shape_cast %282 : vector<2x8xf32> to vector<2x8x1xf32>
    %284 = tpu.reciprocal %283 {approx = true} : vector<2x8x1xf32> -> vector<2x8x1xf32>
    %285 = vector.broadcast %284 : vector<2x8x1xf32> to vector<2x8x8xf32>
    %286 = arith.mulf %281, %285 : vector<2x8x8xf32>
    "tpu.trace_start"() <{level = 10 : i32, message = "bqk,bkd->bqd"}> : () -> ()
    %cst_198 = arith.constant dense<0.000000e+00> : vector<2x8x16xf32>
    %287 = tpu.matmul %286, %271, %cst_198 {dimension_numbers = #tpu.dot_dimension_numbers<[2], [1], [1], [2], [0, 0, 0, 1, 1, 2], [0], [0]>} : vector<2x8x8xf32>, vector<2x8x16xf32>, vector<2x8x16xf32> -> vector<2x8x16xf32>
    "tpu.trace_stop"() : () -> ()
    %288 = vector.shape_cast %287 : vector<2x8x16xf32> to vector<16x16xf32>
    %c1_199 = arith.constant 1 : index
    %c1_200 = arith.constant 1 : index
    %c0_201 = arith.constant 0 : index
    %c0_202 = arith.constant 0 : index
    %289 = vector.load %arg11[%c1_199, %c1_200, %c0_201, %c0_202] : memref<2x2x16x32xf32, #tpu.memory_space<vmem>>, vector<1x1x16x32xf32>
    %290 = vector.shape_cast %289 : vector<1x1x16x32xf32> to vector<16x32xf32>
    %cst_203 = arith.constant dense<0.000000e+00> : vector<16x32xf32>
    %291 = tpu.matmul %288, %290, %cst_203 {dimension_numbers = #tpu.dot_dimension_numbers<[1], [0], [0], [1], [0, 0, 1, 1], [], []>} : vector<16x16xf32>, vector<16x32xf32>, vector<16x32xf32> -> vector<16x32xf32>
    %292 = arith.addf %247, %291 : vector<16x32xf32>
    %c1_204 = arith.constant 1 : index
    %c0_205 = arith.constant 0 : index
    %c0_206 = arith.constant 0 : index
    %293 = vector.load %arg12[%c1_204, %c0_205, %c0_206] : memref<2x1x32xf32, #tpu.memory_space<vmem>>, vector<1x1x32xf32>
    %294 = vector.shape_cast %293 : vector<1x1x32xf32> to vector<1x32xf32>
    %295 = vector.broadcast %294 : vector<1x32xf32> to vector<16x32xf32>
    %296 = arith.addf %292, %295 : vector<16x32xf32>
    %297 = arith.addf %201, %296 : vector<16x32xf32>
    %c1_207 = arith.constant 1 : index
    %c0_208 = arith.constant 0 : index
    %c0_209 = arith.constant 0 : index
    %298 = vector.load %arg13[%c1_207, %c0_208, %c0_209] : memref<2x1x32xf32, #tpu.memory_space<vmem>>, vector<1x1x32xf32>
    %299 = vector.shape_cast %298 : vector<1x1x32xf32> to vector<1x32xf32>
    %c1_210 = arith.constant 1 : index
    %c0_211 = arith.constant 0 : index
    %c0_212 = arith.constant 0 : index
    %300 = vector.load %arg14[%c1_210, %c0_211, %c0_212] : memref<2x1x32xf32, #tpu.memory_space<vmem>>, vector<1x1x32xf32>
    %301 = vector.shape_cast %300 : vector<1x1x32xf32> to vector<1x32xf32>
    %cst_213 = arith.constant dense<0.000000e+00> : vector<16xf32>
    %302 = vector.multi_reduction <add>, %297, %cst_213 [1] : vector<16x32xf32> to vector<16xf32>
    %303 = vector.shape_cast %302 : vector<16xf32> to vector<16x1xf32>
    %cst_214 = arith.constant 3.200000e+01 : f32
    %304 = vector.broadcast %cst_214 : f32 to vector<16x1xf32>
    %305 = arith.divf %303, %304 : vector<16x1xf32>
    %306 = vector.broadcast %305 : vector<16x1xf32> to vector<16x32xf32>
    %307 = arith.subf %297, %306 : vector<16x32xf32>
    %308 = arith.mulf %307, %307 : vector<16x32xf32>
    %cst_215 = arith.constant dense<0.000000e+00> : vector<16xf32>
    %309 = vector.multi_reduction <add>, %308, %cst_215 [1] : vector<16x32xf32> to vector<16xf32>
    %310 = vector.shape_cast %309 : vector<16xf32> to vector<16x1xf32>
    %cst_216 = arith.constant 3.200000e+01 : f32
    %311 = vector.broadcast %cst_216 : f32 to vector<16x1xf32>
    %312 = arith.divf %310, %311 : vector<16x1xf32>
    %313 = vector.broadcast %305 : vector<16x1xf32> to vector<16x32xf32>
    %314 = arith.subf %297, %313 : vector<16x32xf32>
    %cst_217 = arith.constant 9.99999996E-13 : f32
    %315 = vector.broadcast %cst_217 : f32 to vector<16x1xf32>
    %316 = arith.addf %312, %315 : vector<16x1xf32>
    %317 = math.rsqrt %316 : vector<16x1xf32>
    %318 = vector.broadcast %317 : vector<16x1xf32> to vector<16x32xf32>
    %319 = arith.mulf %314, %318 : vector<16x32xf32>
    %320 = vector.broadcast %299 : vector<1x32xf32> to vector<16x32xf32>
    %321 = arith.mulf %319, %320 : vector<16x32xf32>
    %322 = vector.broadcast %301 : vector<1x32xf32> to vector<16x32xf32>
    %323 = arith.addf %321, %322 : vector<16x32xf32>
    %c1_218 = arith.constant 1 : index
    %c0_219 = arith.constant 0 : index
    %c0_220 = arith.constant 0 : index
    %324 = vector.load %arg15[%c1_218, %c0_219, %c0_220] : memref<2x32x64xf32, #tpu.memory_space<vmem>>, vector<1x32x64xf32>
    %325 = vector.shape_cast %324 : vector<1x32x64xf32> to vector<32x64xf32>
    %cst_221 = arith.constant dense<0.000000e+00> : vector<16x64xf32>
    %326 = tpu.matmul %323, %325, %cst_221 {dimension_numbers = #tpu.dot_dimension_numbers<[1], [0], [0], [1], [0, 0, 1, 1], [], []>} : vector<16x32xf32>, vector<32x64xf32>, vector<16x64xf32> -> vector<16x64xf32>
    %c1_222 = arith.constant 1 : index
    %c0_223 = arith.constant 0 : index
    %c0_224 = arith.constant 0 : index
    %327 = vector.load %arg16[%c1_222, %c0_223, %c0_224] : memref<2x1x64xf32, #tpu.memory_space<vmem>>, vector<1x1x64xf32>
    %328 = vector.shape_cast %327 : vector<1x1x64xf32> to vector<1x64xf32>
    %329 = vector.broadcast %328 : vector<1x64xf32> to vector<16x64xf32>
    %330 = arith.addf %326, %329 : vector<16x64xf32>
    %cst_225 = arith.constant 5.000000e-01 : f32
    %331 = vector.broadcast %cst_225 : f32 to vector<16x64xf32>
    %332 = arith.mulf %331, %330 : vector<16x64xf32>
    %cst_226 = arith.constant 4.471500e-02 : f32
    %333 = vector.broadcast %cst_226 : f32 to vector<16x64xf32>
    %334 = arith.mulf %333, %330 : vector<16x64xf32>
    %335 = arith.mulf %334, %330 : vector<16x64xf32>
    %336 = arith.mulf %335, %330 : vector<16x64xf32>
    %337 = arith.addf %330, %336 : vector<16x64xf32>
    %cst_227 = arith.constant 0.797884583 : f32
    %338 = vector.broadcast %cst_227 : f32 to vector<16x64xf32>
    %339 = arith.mulf %338, %337 : vector<16x64xf32>
    %340 = math.tanh %339 : vector<16x64xf32>
    %cst_228 = arith.constant 1.000000e+00 : f32
    %341 = vector.broadcast %cst_228 : f32 to vector<16x64xf32>
    %342 = arith.addf %341, %340 : vector<16x64xf32>
    %343 = arith.mulf %332, %342 : vector<16x64xf32>
    %c1_229 = arith.constant 1 : index
    %c0_230 = arith.constant 0 : index
    %c0_231 = arith.constant 0 : index
    %344 = vector.load %arg17[%c1_229, %c0_230, %c0_231] : memref<2x64x32xf32, #tpu.memory_space<vmem>>, vector<1x64x32xf32>
    %345 = vector.shape_cast %344 : vector<1x64x32xf32> to vector<64x32xf32>
    %cst_232 = arith.constant dense<0.000000e+00> : vector<16x32xf32>
    %346 = tpu.matmul %343, %345, %cst_232 {dimension_numbers = #tpu.dot_dimension_numbers<[1], [0], [0], [1], [0, 0, 1, 1], [], []>} : vector<16x64xf32>, vector<64x32xf32>, vector<16x32xf32> -> vector<16x32xf32>
    %c1_233 = arith.constant 1 : index
    %c0_234 = arith.constant 0 : index
    %c0_235 = arith.constant 0 : index
    %347 = vector.load %arg18[%c1_233, %c0_234, %c0_235] : memref<2x1x32xf32, #tpu.memory_space<vmem>>, vector<1x1x32xf32>
    %348 = vector.shape_cast %347 : vector<1x1x32xf32> to vector<1x32xf32>
    %349 = vector.broadcast %348 : vector<1x32xf32> to vector<16x32xf32>
    %350 = arith.addf %346, %349 : vector<16x32xf32>
    %351 = arith.addf %323, %350 : vector<16x32xf32>
    %c1_236 = arith.constant 1 : index
    %c0_237 = arith.constant 0 : index
    %c0_238 = arith.constant 0 : index
    %352 = vector.load %arg19[%c1_236, %c0_237, %c0_238] : memref<2x1x32xf32, #tpu.memory_space<vmem>>, vector<1x1x32xf32>
    %353 = vector.shape_cast %352 : vector<1x1x32xf32> to vector<1x32xf32>
    %c1_239 = arith.constant 1 : index
    %c0_240 = arith.constant 0 : index
    %c0_241 = arith.constant 0 : index
    %354 = vector.load %arg20[%c1_239, %c0_240, %c0_241] : memref<2x1x32xf32, #tpu.memory_space<vmem>>, vector<1x1x32xf32>
    %355 = vector.shape_cast %354 : vector<1x1x32xf32> to vector<1x32xf32>
    %cst_242 = arith.constant dense<0.000000e+00> : vector<16xf32>
    %356 = vector.multi_reduction <add>, %351, %cst_242 [1] : vector<16x32xf32> to vector<16xf32>
    %357 = vector.shape_cast %356 : vector<16xf32> to vector<16x1xf32>
    %cst_243 = arith.constant 3.200000e+01 : f32
    %358 = vector.broadcast %cst_243 : f32 to vector<16x1xf32>
    %359 = arith.divf %357, %358 : vector<16x1xf32>
    %360 = vector.broadcast %359 : vector<16x1xf32> to vector<16x32xf32>
    %361 = arith.subf %351, %360 : vector<16x32xf32>
    %362 = arith.mulf %361, %361 : vector<16x32xf32>
    %cst_244 = arith.constant dense<0.000000e+00> : vector<16xf32>
    %363 = vector.multi_reduction <add>, %362, %cst_244 [1] : vector<16x32xf32> to vector<16xf32>
    %364 = vector.shape_cast %363 : vector<16xf32> to vector<16x1xf32>
    %cst_245 = arith.constant 3.200000e+01 : f32
    %365 = vector.broadcast %cst_245 : f32 to vector<16x1xf32>
    %366 = arith.divf %364, %365 : vector<16x1xf32>
    %367 = vector.broadcast %359 : vector<16x1xf32> to vector<16x32xf32>
    %368 = arith.subf %351, %367 : vector<16x32xf32>
    %cst_246 = arith.constant 9.99999996E-13 : f32
    %369 = vector.broadcast %cst_246 : f32 to vector<16x1xf32>
    %370 = arith.addf %366, %369 : vector<16x1xf32>
    %371 = math.rsqrt %370 : vector<16x1xf32>
    %372 = vector.broadcast %371 : vector<16x1xf32> to vector<16x32xf32>
    %373 = arith.mulf %368, %372 : vector<16x32xf32>
    %374 = vector.broadcast %353 : vector<1x32xf32> to vector<16x32xf32>
    %375 = arith.mulf %373, %374 : vector<16x32xf32>
    %376 = vector.broadcast %355 : vector<1x32xf32> to vector<16x32xf32>
    %377 = arith.addf %375, %376 : vector<16x32xf32>
    %c0_247 = arith.constant 0 : index
    %c0_248 = arith.constant 0 : index
    %378 = vector.load %arg2[%c0_247, %c0_248] : memref<2x16xf32, #tpu.memory_space<vmem>>, vector<2x16xf32>
    %cst_249 = arith.constant dense<0.000000e+00> : vector<2x32xf32>
    %379 = tpu.matmul %378, %377, %cst_249 {dimension_numbers = #tpu.dot_dimension_numbers<[1], [0], [0], [1], [0, 0, 1, 1], [], []>} : vector<2x16xf32>, vector<16x32xf32>, vector<2x32xf32> -> vector<2x32xf32>
    %c0_250 = arith.constant 0 : index
    %c0_251 = arith.constant 0 : index
    %380 = vector.load %arg21[%c0_250, %c0_251] : memref<32x32xf32, #tpu.memory_space<vmem>>, vector<32x32xf32>
    %cst_252 = arith.constant dense<0.000000e+00> : vector<2x32xf32>
    %381 = tpu.matmul %379, %380, %cst_252 {dimension_numbers = #tpu.dot_dimension_numbers<[1], [0], [0], [1], [0, 0, 1, 1], [], []>} : vector<2x32xf32>, vector<32x32xf32>, vector<2x32xf32> -> vector<2x32xf32>
    %c0_253 = arith.constant 0 : index
    %c0_254 = arith.constant 0 : index
    %382 = vector.load %arg22[%c0_253, %c0_254] : memref<1x32xf32, #tpu.memory_space<vmem>>, vector<1x32xf32>
    %383 = vector.broadcast %382 : vector<1x32xf32> to vector<2x32xf32>
    %384 = arith.addf %381, %383 : vector<2x32xf32>
    %385 = math.tanh %384 : vector<2x32xf32>
    %c0_255 = arith.constant 0 : index
    %c0_256 = arith.constant 0 : index
    %386 = vector.load %arg23[%c0_255, %c0_256] : memref<32x256xf32, #tpu.memory_space<vmem>>, vector<32x256xf32>
    %cst_257 = arith.constant dense<0.000000e+00> : vector<2x256xf32>
    %387 = tpu.matmul %385, %386, %cst_257 {dimension_numbers = #tpu.dot_dimension_numbers<[1], [0], [0], [1], [0, 0, 1, 1], [], []>} : vector<2x32xf32>, vector<32x256xf32>, vector<2x256xf32> -> vector<2x256xf32>
    %c0_258 = arith.constant 0 : index
    %c0_259 = arith.constant 0 : index
    %388 = vector.load %arg24[%c0_258, %c0_259] : memref<1x256xf32, #tpu.memory_space<vmem>>, vector<1x256xf32>
    %389 = vector.broadcast %388 : vector<1x256xf32> to vector<2x256xf32>
    %390 = arith.addf %387, %389 : vector<2x256xf32>
    %c0_260 = arith.constant 0 : index
    %c0_261 = arith.constant 0 : index
    %391 = vector.load %arg25[%c0_260, %c0_261] : memref<256x128xf32, #tpu.memory_space<vmem>>, vector<256x128xf32>
    %cst_262 = arith.constant dense<0.000000e+00> : vector<2x128xf32>
    %392 = tpu.matmul %390, %391, %cst_262 {dimension_numbers = #tpu.dot_dimension_numbers<[1], [0], [0], [1], [0, 0, 1, 1], [], []>} : vector<2x256xf32>, vector<256x128xf32>, vector<2x128xf32> -> vector<2x128xf32>
    %c0_263 = arith.constant 0 : index
    %c0_264 = arith.constant 0 : index
    %393 = vector.load %arg26[%c0_263, %c0_264] : memref<1x128xf32, #tpu.memory_space<vmem>>, vector<1x128xf32>
    %394 = vector.broadcast %393 : vector<1x128xf32> to vector<2x128xf32>
    %395 = arith.addf %392, %394 : vector<2x128xf32>
    %c0_265 = arith.constant 0 : index
    %c0_266 = arith.constant 0 : index
    %396 = vector.load %arg27[%c0_265, %c0_266] : memref<2x128xf32, #tpu.memory_space<vmem>>, vector<2x128xf32>
    tpu.vector_store %arg27[%c0_265, %c0_266], %395 {strides = array<i32>} : memref<2x128xf32, #tpu.memory_space<vmem>>, vector<2x128xf32>,
    return
  }
}

</mosaic_0001>

<bundles_post_ra>
// kernel: custom_bert_forward.1
= control target key start
LH: loop header
LB: loop body
LE: loop exit
PB: predicated region body
PF: predicated region fallthrough
CT: control target
= control target key end

     0   :  { %s5473_s0 = inlined_call_operand.vmem [shape: f32[16,32], index: 0, kind: input, shape index: {}]   ;;  %s5474_s1 = inlined_call_operand.vmem [shape: f32[2,1,8], index: 1, kind: input, shape index: {}]   ;;  %s5475_s2 = inlined_call_operand.vmem [shape: f32[2,16], index: 2, kind: input, shape index: {}]   ;;  %s5476_s3 = inlined_call_operand.vmem [shape: f32[1,32], index: 3, kind: input, shape index: {}]   ;;  %s5477_s4 = inlined_call_operand.vmem [shape: f32[1,32], index: 4, kind: input, shape index: {}]   ;;  %s5478_s5 = inlined_call_operand.vmem [shape: f32[2,2,32,16], index: 5, kind: input, shape index: {}]   ;;  %s5479_s6 = inlined_call_operand.vmem [shape: f32[2,2,1,16], index: 6, kind: input, shape index: {}]   ;;  %s5480_s7 = inlined_call_operand.vmem [shape: f32[2,2,32,16], index: 7, kind: input, shape index: {}]   ;;  %s5481_s8 = inlined_call_operand.vmem [shape: f32[2,2,1,16], index: 8, kind: input, shape index: {}]   ;;  %s5482_s9 = inlined_call_operand.vmem [shape: f32[2,2,32,16], index: 9, kind: input, shape index: {}]   ;;  %s5483_s10 = inlined_call_operand.vmem [shape: f32[2,2,1,16], index: 10, kind: input, shape index: {}]   ;;  %s5484_s11 = inlined_call_operand.vmem [shape: f32[2,2,16,32], index: 11, kind: input, shape index: {}]   ;;  %s5485_s12 = inlined_call_operand.vmem [shape: f32[2,1,32], index: 12, kind: input, shape index: {}]   ;;  %s5486_s13 = inlined_call_operand.vmem [shape: f32[2,1,32], index: 13, kind: input, shape index: {}]   ;;  %s5487_s14 = inlined_call_operand.vmem [shape: f32[2,1,32], index: 14, kind: input, shape index: {}]   ;;  %s5488_s15 = inlined_call_operand.vmem [shape: f32[2,32,64], index: 15, kind: input, shape index: {}]   ;;  %s5489_s16 = inlined_call_operand.vmem [shape: f32[2,1,64], index: 16, kind: input, shape index: {}]   ;;  %s5490_s17 = inlined_call_operand.vmem [shape: f32[2,64,32], index: 17, kind: input, shape index: {}]   ;;  %s5491_s18 = inlined_call_operand.vmem [shape: f32[2,1,32], index: 18, kind: input, shape index: {}]   ;;  %s5492_s19 = inlined_call_operand.vmem [shape: f32[2,1,32], index: 19, kind: input, shape index: {}]   ;;  %s5493_s20 = inlined_call_operand.vmem [shape: f32[2,1,32], index: 20, kind: input, shape index: {}]   ;;  %s5494_s21 = inlined_call_operand.vmem [shape: f32[32,32], index: 21, kind: input, shape index: {}]   ;;  %s5495_s22 = inlined_call_operand.vmem [shape: f32[1,32], index: 22, kind: input, shape index: {}]   ;;  %s5496_s23 = inlined_call_operand.vmem [shape: f32[32,256], index: 23, kind: input, shape index: {}]   ;;  %s5497_s24 = inlined_call_operand.vmem [shape: f32[1,256], index: 24, kind: input, shape index: {}]   ;;  %s5498_s25 = inlined_call_operand.vmem [shape: f32[256,128], index: 25, kind: input, shape index: {}]   ;;  %s5499_s26 = inlined_call_operand.vmem [shape: f32[1,128], index: 26, kind: input, shape index: {}]   ;;  %s5500_s27 = inlined_call_operand.hbm [shape: f32[2,128], index: 27, kind: output, shape index: {}]  }
   0x1   :  { %5510 = sst [smem:[#allocation5_spill]] %s5473_s0 }
   0x2   :  { %5511 = sst [smem:[#allocation6_spill]] %s5474_s1 }
   0x3   :  { %5512 = sst [smem:[#allocation7_spill]] %s5475_s2 }
   0x4   :  { %5513 = sst [smem:[#allocation8_spill]] %s5476_s3 }
   0x5   :  { %5514 = sst [smem:[#allocation9_spill]] %s5477_s4 }
   0x6   :  { %5515 = sst [smem:[#allocation10_spill]] %s5478_s5 }
   0x7   :  { %5516 = sst [smem:[#allocation11_spill]] %s5479_s6 }
   0x8   :  { %5517 = sst [smem:[#allocation12_spill]] %s5480_s7 }
   0x9   :  { %5518 = sst [smem:[#allocation13_spill]] %s5481_s8 }
   0xa   :  { %5519 = sst [smem:[#allocation14_spill]] %s5482_s9 }
   0xb   :  { %5520 = sst [smem:[#allocation15_spill]] %s5483_s10 }
   0xc   :  { %5521 = sst [smem:[#allocation16_spill]] %s5484_s11 }
   0xd   :  { %s5522_s8 = sld [smem:[#allocation5_spill]]  ;;  %vm91_vm0 = vcmask 261120  }
  0x13   :  { %v87_v0 = vld [vmem:[%s5522_s8] sm:$0xff]  ;;  %v88_v1 = vld [vmem:[%s5522_s8 + $0x8] sm:$0xff] }
  0x14   :  { %32 = vsyncpa [#allocation3], 0  ;;  %v92_v2 = vsel %vm91_vm0, %v87_v0, 0.0  ;;  %v95_v3 = vsel %vm91_vm0, %v88_v1, 0.0  ;;  %s5523_s0 = sld [smem:[#allocation10_spill]]  ;;  %v4614_v42 = vmov 0.0  }
  0x15   :  { %93 = vadd.xlane.f32.xlu0 %v92_v2  ;;  %s5524_s4 = sld [smem:[#allocation12_spill]]  ;;  %4252 = vmatprep.subr.mxu0 %v4614_v42  ;;  %vm4615_vm1 = vmmov 0   ;;  %vm401_vm2 = vcmask 130048   ;;  %vm570_vm3 = vcmask 64512   ;;  %vm1674_vm4 = vcmask 523264  }
  0x16   :  { %s5525_s9 = sld [smem:[#allocation8_spill]]  ;;  %4254 = vmatprep.mubr.msk.f32.mxu0 %vm4615_vm1, %v4614_v42 }
  0x17   :  { %s5526_s10 = sld [smem:[#allocation9_spill]] }
  0x18   :  { %s5527_s30 = sld [smem:[#allocation14_spill]] }
  0x19   :  { %96 = vadd.xlane.f32.xlu0 %v95_v3  ;;  %s5528_s2 = sld [smem:[#allocation13_spill]] }
  0x1a   :  { %v140_v14 = vld [vmem:[%s5523_s0 + $0x18] sm:$0xff]  ;;  %v139_v15 = vld [vmem:[%s5523_s0 + $0x10] sm:$0xff]  ;;  %v138_v16 = vld [vmem:[%s5523_s0 + $0x8] sm:$0xff]  ;;  %s5529_s8 = sld [smem:[#allocation11_spill]] }
  0x1b   :  { %4209 = vmatprep.subr.mxu1 %v140_v14  ;;  %v137_v17 = vld [vmem:[%s5523_s0] sm:$0xff]  ;;  %v232_v18 = vld [vmem:[%s5524_s4 + $0x18] sm:$0xff]  ;;  %v231_v35 = vld [vmem:[%s5524_s4 + $0x10] sm:$0xff]  ;;  %s5530_s28 = sld [smem:[#allocation15_spill]] }
  0x1c   :  { %4210 = vmatpush3.msra.mxu1 %v140_v14  ;;  %v3845_v26 = vld [vmem:[%s5525_s9] ss:$0 sm:$0xff]  ;;  %v230_v36 = vld [vmem:[%s5524_s4 + $0x8] sm:$0xff]  ;;  %v3875_v53 = vld [vmem:[%s5524_s4 + $0x38] sm:$0xff]  ;;  %s5531_s29 = sld [smem:[#allocation6_spill]] }
  0x1d   :  { %4211 = vmatprep.subr.mxu1 %v139_v15  ;;  %v3846_v28 = vld [vmem:[%s5526_s10] ss:$0 sm:$0xff]  ;;  %v3874_v59 = vld [vmem:[%s5524_s4 + $0x30] sm:$0xff]  ;;  %v3873_v60 = vld [vmem:[%s5524_s4 + $0x28] sm:$0xff] }
  0x1e   :  { %4212 = vmatpush3.msra.mxu1 %v139_v15  ;;  %v229_v37 = vld [vmem:[%s5524_s4] sm:$0xff]  ;;  %v318_v38 = vld [vmem:[%s5527_s30 + $0x18] sm:$0xff]  ;;  %v317_v39 = vld [vmem:[%s5527_s30 + $0x10] sm:$0xff] }
  0x1f   :  { %4213 = vmatprep.subr.mxu1 %v138_v16  ;;  %v316_v40 = vld [vmem:[%s5527_s30 + $0x8] sm:$0xff]  ;;  %v315_v41 = vld [vmem:[%s5527_s30] sm:$0xff] }
  0x20   :  { %4214 = vmatpush3.msra.mxu1 %v138_v16  ;;  %v3850_v46 = vld [vmem:[%s5528_s2] ss:$0 sm:$0xff] }
  0x21   :  { %4215 = vmatprep.subr.mxu1 %v137_v17  ;;  %v3847_v49 = vld [vmem:[%s5529_s8] ss:$0 sm:$0xff] }
  0x22   :  { %4216 = vmatpush3.msra.mxu1 %v137_v17  ;;  %v3853_v51 = vld [vmem:[%s5530_s28] ss:$0 sm:$0xff] }
  0x23   :  { %4220 = vmatprep.subr.mxu1 %v232_v18  ;;  %v3872_v61 = vld [vmem:[%s5524_s4 + $0x20] sm:$0xff] }
  0x24   :  { %v4872_v63 = vld [vmem:[%s5531_s29] ss:$0 sm:$0xff] }
  0x9e   :  { %v94_v4 = vpop.xlane.xlu0 %93 }
  0x9f   :  { %v99_v5 = vmul.f32 0.03125, %v94_v4  ;;  %v4878_v4 = vld [vmem:[%s5531_s29 + $0x1] ss:$0 sm:$0xff]  ;;  %s5532_s29 = sld [smem:[#allocation16_spill]] }
  0xa1   :  { %v101_v6 = vsub.f32 %v87_v0, %v99_v5 }
  0xa2   :  { %v97_v7 = vpop.xlane.xlu0 %96 }
  0xa3   :  { %v100_v8 = vmul.f32 0.03125, %v97_v7  ;;  %v103_v9 = vmul.f32 %v101_v6, %v101_v6 }
  0xa5   :  { %v102_v10 = vsub.f32 %v88_v1, %v100_v8  ;;  %v105_v11 = vsel %vm91_vm0, %v103_v9, 0.0 }
  0xa6   :  { %106 = vadd.xlane.f32.xlu1 %v105_v11 }
  0xa7   :  { %v104_v12 = vmul.f32 %v102_v10, %v102_v10 }
  0xa9   :  { %v108_v13 = vsel %vm91_vm0, %v104_v12, 0.0 }
  0xaa   :  { %109 = vadd.xlane.f32.xlu1 %v108_v13 }
 0x12f   :  { %v107_v19 = vpop.xlane.xlu1 %106 }
 0x130   :  { %v111_v20 = vmul.f32 0.03125, %v107_v19 }
 0x132   :  { %v113_v21 = vadd.f32 1e-12, %v111_v20 }
 0x133   :  { %v110_v22 = vpop.xlane.xlu1 %109 }
 0x134   :  { %4530 = vrsqrt.f32 %v113_v21  ;;  %v112_v23 = vmul.f32 0.03125, %v110_v22 }
 0x136   :  { %v114_v24 = vadd.f32 1e-12, %v112_v23 }
 0x138   :  { %4532 = vrsqrt.f32 %v114_v24 }
 0x141   :  { %v4531_v25 = vpop.eup %4530 }
 0x142   :  { %v117_v27 = vmul.f32 %v4531_v25, %v101_v6 }
 0x144   :  { %v125_v29 = vmul.f32 %v3845_v26, %v117_v27 }
 0x145   :  { %v4533_v30 = vpop.eup %4532 }
 0x146   :  { %v4788_v31 = vadd.f32 %v3846_v28, %v125_v29  ;;  %v118_v32 = vmul.f32 %v4533_v30, %v102_v10  ;;  %v3877_v10 = vld [vmem:[%s5528_s2 + $0x1] ss:$0 sm:$0xff]  ;;  %v3867_v29 = vld [vmem:[%s5523_s0 + $0x38] sm:$0xff] }
 0x148   :  { %v126_v33 = vmul.f32 %v3845_v26, %v118_v32  ;;  %4217 = vmatprep.mubr.msk.f32.mxu1 %vm91_vm0, %v4788_v31 }
 0x14a   :  { %v4792_v34 = vadd.f32 %v3846_v28, %v126_v33  ;;  %v3866_v33 = vld [vmem:[%s5523_s0 + $0x30] sm:$0xff] }
 0x14c   :  { %4218 = vmatmul.mubr.msk.f32.vlgmr.msra.gmra.mxu1 %vm91_vm0, %v4792_v34 }
 0x14d   :  { %4221 = vmatpush3.msra.mxu1 %v232_v18  ;;  %4228 = vmatprep.mubr.msk.f32.mxu1 %vm91_vm0, %v4788_v31 }
 0x14e   :  { %4222 = vmatprep.subr.mxu1 %v231_v35 }
 0x14f   :  { %4223 = vmatpush3.msra.mxu1 %v231_v35  ;;  %v3865_v35 = vld [vmem:[%s5523_s0 + $0x28] sm:$0xff] }
 0x150   :  { %4224 = vmatprep.subr.mxu1 %v230_v36 }
 0x151   :  { %4225 = vmatpush3.msra.mxu1 %v230_v36  ;;  %v3864_v36 = vld [vmem:[%s5523_s0 + $0x20] sm:$0xff] }
 0x152   :  { %4226 = vmatprep.subr.mxu1 %v229_v37 }
 0x153   :  { %4227 = vmatpush3.msra.mxu1 %v229_v37  ;;  %v3883_v37 = vld [vmem:[%s5527_s30 + $0x38] sm:$0xff] }
 0x154   :  { %4229 = vmatmul.mubr.msk.f32.vlgmr.msra.gmra.mxu1 %vm91_vm0, %v4792_v34  ;;  %4231 = vmatprep.subr.mxu1 %v318_v38 }
 0x155   :  { %4232 = vmatpush3.msra.mxu1 %v318_v38  ;;  %4239 = vmatprep.mubr.msk.f32.mxu1 %vm91_vm0, %v4788_v31  ;;  %v3882_v38 = vld [vmem:[%s5527_s30 + $0x30] sm:$0xff] }
 0x156   :  { %4233 = vmatprep.subr.mxu1 %v317_v39 }
 0x157   :  { %4234 = vmatpush3.msra.mxu1 %v317_v39  ;;  %v3881_v39 = vld [vmem:[%s5527_s30 + $0x28] sm:$0xff] }
 0x158   :  { %4235 = vmatprep.subr.mxu1 %v316_v40 }
 0x159   :  { %4236 = vmatpush3.msra.mxu1 %v316_v40  ;;  %v3880_v40 = vld [vmem:[%s5527_s30 + $0x20] sm:$0xff] }
 0x15a   :  { %4237 = vmatprep.subr.mxu1 %v315_v41 }
 0x15b   :  { %4238 = vmatpush3.msra.mxu1 %v315_v41 }
 0x15c   :  { %4240 = vmatmul.mubr.msk.f32.vlgmr.msra.gmra.mxu1 %vm91_vm0, %v4792_v34  ;;  %4242 = vmatprep.subr.mxu1 %v4614_v42 }
 0x15d   :  { %4244 = vmatprep.mubr.msk.f32.mxu1 %vm4615_vm1, %v4614_v42 }
 0x20c   :  { %v4219_v43 = vpop.f32.mrf.mxu1 }
 0x20d   :  { %v226_v56 = vadd.f32 %v4219_v43, %v3847_v49 }
 0x20e   :  { %v220_v44 = vpop.f32.mrf.mxu1 }
 0x20f   :  { %v221_v50 = vadd.f32 %v3847_v49, %v220_v44 }
 0x214   :  { %v4230_v45 = vpop.f32.mrf.mxu1 }
 0x215   :  { %v312_v52 = vadd.f32 %v4230_v45, %v3850_v46 }
 0x216   :  { %v306_v47 = vpop.f32.mrf.mxu1 }
 0x217   :  { %v307_v48 = vadd.f32 %v3850_v46, %v306_v47  ;;  %v3869_v47 = vld [vmem:[%s5529_s8 + $0x1] ss:$0 sm:$0xff] }
 0x219   :  { %4243 = vmatpush3.xpose.msk.msra.mxu1 %vm401_vm2, %v307_v48 }
 0x21a   :  { %4247 = vmatprep.subr.mxu1 %v4614_v42 }
 0x21c   :  { %v4241_v54 = vpop.f32.mrf.mxu1  ;;  %4245 = vmatmul.mubr.msk.f32.vlgmr.msra.gmra.mxu1 %vm401_vm2, %v221_v50  ;;  %v3885_v50 = vld [vmem:[%s5530_s28 + $0x1] ss:$0 sm:$0xff] }
 0x21d   :  { %v4846_v55 = vadd.f32 %v4241_v54, %v3853_v51  ;;  %4248 = vmatpush3.xpose.msk.msra.mxu1 %vm401_vm2, %v312_v52  ;;  %4249 = vmatprep.mubr.msk.f32.mxu1 %vm4615_vm1, %v4614_v42 }
 0x21e   :  { %v392_v57 = vpop.f32.mrf.mxu1  ;;  %4273 = vmatprep.subr.mxu1 %v3875_v53 }
 0x21f   :  { %v393_v58 = vadd.f32 %v3853_v51, %v392_v57 }
 0x220   :  { %4250 = vmatmul.mubr.msk.f32.vlgmr.msra.gmra.mxu1 %vm401_vm2, %v226_v56 }
 0x221   :  { %4253 = vmatpush3.msra.mxu0 %v393_v58  ;;  %4274 = vmatpush3.msra.mxu1 %v3875_v53 }
 0x222   :  { %4281 = vmatprep.mubr.msk.f32.mxu1 %vm91_vm0, %v4788_v31  ;;  %4275 = vmatprep.subr.mxu1 %v3874_v59 }
 0x223   :  { %4276 = vmatpush3.msra.mxu1 %v3874_v59  ;;  %4257 = vmatprep.subr.mxu0 %v4614_v42 }
 0x224   :  { %4277 = vmatprep.subr.mxu1 %v3873_v60 }
 0x225   :  { %4278 = vmatpush3.msra.mxu1 %v3873_v60 }
 0x226   :  { %4279 = vmatprep.subr.mxu1 %v3872_v61 }
 0x227   :  { %4280 = vmatpush3.msra.mxu1 %v3872_v61 }
 0x228   :  { %4282 = vmatmul.mubr.msk.f32.vlgmr.msra.gmra.mxu1 %vm91_vm0, %v4792_v34  ;;  %4295 = vmatprep.subr.mxu1 %v4614_v42 }
 0x229   :  { %4297 = vmatprep.mubr.msk.f32.mxu1 %vm4615_vm1, %v4614_v42 }
 0x2dc   :  { %v474_v62 = vpop.f32.mrf.mxu1 }
 0x2dd   :  { %v554_v0 = vmul.f32 0.25, %v474_v62 }
 0x2de   :  { %v4246_v1 = vpop.f32.mrf.mxu1 }
 0x2df   :  { %v568_v2 = vadd.f32 %v4872_v63, %v554_v0 }
 0x2e0   :  { %v550_v3 = vpop.f32.mrf.mxu1 }
 0x2e1   :  { %v555_v5 = vmul.f32 0.25, %v550_v3  ;;  %v571_v6 = vsel %vm570_vm3, %v568_v2, -inf }
 0x2e2   :  { %572 = vmax.xlane.f32.xlu0 %v571_v6  ;;  %v4251_v7 = vpop.f32.mrf.mxu1 }
 0x2e3   :  { %v569_v8 = vadd.f32 %v4878_v4, %v555_v5 }
 0x2e5   :  { %v574_v9 = vsel %vm570_vm3, %v569_v8, -inf }
 0x2e6   :  { %575 = vmax.xlane.f32.xlu1 %v574_v9 }
 0x2e8   :  { %v4283_v11 = vpop.f32.mrf.mxu1 }
 0x2e9   :  { %v4886_v12 = vadd.f32 %v4283_v11, %v3877_v10 }
 0x2ea   :  { %v908_v13 = vpop.f32.mrf.mxu1 }
 0x2eb   :  { %v909_v14 = vadd.f32 %v3877_v10, %v908_v13 }
 0x2ed   :  { %4296 = vmatpush3.xpose.msk.msra.mxu1 %vm401_vm2, %v909_v14  ;;  %v740_v14 = vld [vmem:[%s5532_s29 + $0x8] sm:$0xff] }
 0x2ee   :  { %4300 = vmatprep.subr.mxu1 %v4614_v42 }
 0x36b   :  { %v573_v15 = vpop.xlane.xlu0 %572 }
 0x36c   :  { %v577_v16 = vsub.f32 %v568_v2, %v573_v15 }
 0x36e   :  { %v579_v17 = vmul.f32 1.442695, %v577_v16 }
 0x36f   :  { %v576_v18 = vpop.xlane.xlu1 %575 }
 0x370   :  { %4534 = vpow2.f32 %v579_v17  ;;  %v578_v19 = vsub.f32 %v569_v8, %v576_v18 }
 0x372   :  { %v581_v20 = vmul.f32 1.442695, %v578_v19 }
 0x374   :  { %4536 = vpow2.f32 %v581_v20 }
 0x37d   :  { %v4535_v21 = vpop.eup %4534 }
 0x37e   :  { %v583_v22 = vsel %vm570_vm3, %v4535_v21, 0.0 }
 0x37f   :  { %584 = vadd.xlane.f32.xlu0 %v583_v22  ;;  %v3895_v22 = vld [vmem:[%s5532_s29 + $0x18] sm:$0xff] }
 0x381   :  { %v4537_v23 = vpop.eup %4536 }
 0x382   :  { %v586_v24 = vsel %vm570_vm3, %v4537_v23, 0.0 }
 0x383   :  { %587 = vadd.xlane.f32.xlu1 %v586_v24 }
 0x408   :  { %v585_v25 = vpop.xlane.xlu0 %584 }
 0x409   :  { %4538 = vrcp.f32 %v585_v25 }
 0x40c   :  { %v588_v26 = vpop.xlane.xlu1 %587 }
 0x40d   :  { %4540 = vrcp.f32 %v588_v26 }
 0x416   :  { %v4539_v27 = vpop.eup %4538 }
 0x417   :  { %v591_v28 = vmul.f32 %v4539_v27, %v4535_v21  ;;  %v739_v21 = vld [vmem:[%s5532_s29] sm:$0xff] }
 0x419   :  { %4255 = vmatmul.mubr.msk.f32.vlgmr.msra.gmra.mxu0 %vm570_vm3, %v591_v28 }
 0x41a   :  { %v4541_v30 = vpop.eup %4540  ;;  %4258 = vmatpush3.msra.mxu0 %v4846_v55  ;;  %4259 = vmatprep.mubr.msk.f32.mxu0 %vm4615_vm1, %v4614_v42 }
 0x41b   :  { %4262 = vmatprep.subr.mxu0 %v3867_v29  ;;  %v592_v32 = vmul.f32 %v4541_v30, %v4537_v23  ;;  %v3894_v23 = vld [vmem:[%s5532_s29 + $0x10] sm:$0xff]  ;;  %v3900_v30 = vld [vmem:[%s5485_s12] ss:$0 sm:$0xff] }
 0x41d   :  { %4260 = vmatmul.mubr.msk.f32.vlgmr.msra.gmra.mxu0 %vm570_vm3, %v592_v32 }
 0x41e   :  { %4263 = vmatpush3.msra.mxu0 %v3867_v29  ;;  %4270 = vmatprep.mubr.msk.f32.mxu0 %vm91_vm0, %v4788_v31 }
 0x41f   :  { %4264 = vmatprep.subr.mxu0 %v3866_v33 }
 0x420   :  { %4265 = vmatpush3.msra.mxu0 %v3866_v33 }
 0x421   :  { %4266 = vmatprep.subr.mxu0 %v3865_v35 }
 0x422   :  { %4267 = vmatpush3.msra.mxu0 %v3865_v35 }
 0x423   :  { %4268 = vmatprep.subr.mxu0 %v3864_v36 }
 0x424   :  { %4269 = vmatpush3.msra.mxu0 %v3864_v36 }
 0x425   :  { %4271 = vmatmul.mubr.msk.f32.vlgmr.msra.gmra.mxu0 %vm91_vm0, %v4792_v34  ;;  %4284 = vmatprep.subr.mxu0 %v3883_v37 }
 0x426   :  { %4285 = vmatpush3.msra.mxu0 %v3883_v37  ;;  %4292 = vmatprep.mubr.msk.f32.mxu0 %vm91_vm0, %v4788_v31 }
 0x427   :  { %4286 = vmatprep.subr.mxu0 %v3882_v38 }
 0x428   :  { %4287 = vmatpush3.msra.mxu0 %v3882_v38 }
 0x429   :  { %4288 = vmatprep.subr.mxu0 %v3881_v39 }
 0x42a   :  { %4289 = vmatpush3.msra.mxu0 %v3881_v39 }
 0x42b   :  { %4290 = vmatprep.subr.mxu0 %v3880_v40 }
 0x42c   :  { %4291 = vmatpush3.msra.mxu0 %v3880_v40 }
 0x42d   :  { %4293 = vmatmul.mubr.msk.f32.vlgmr.msra.gmra.mxu0 %vm91_vm0, %v4792_v34  ;;  %4305 = vmatprep.subr.mxu0 %v4614_v42 }
 0x42e   :  { %4307 = vmatprep.mubr.msk.f32.mxu0 %vm4615_vm1, %v4614_v42 }
 0x4d9   :  { %v662_v41 = vpop.f32.mrf.mxu0 }
 0x4db   :  { %v4256_v43 = vpop.f32.mrf.mxu0 }
 0x4dd   :  { %v4932_v44 = vpop.f32.mrf.mxu0 }
 0x4df   :  { %v4261_v45 = vpop.f32.mrf.mxu0 }
 0x4e5   :  { %v4272_v46 = vpop.f32.mrf.mxu0 }
 0x4e6   :  { %v826_v51 = vadd.f32 %v4272_v46, %v3869_v47 }
 0x4e7   :  { %v820_v48 = vpop.f32.mrf.mxu0 }
 0x4e8   :  { %v821_v49 = vadd.f32 %v3869_v47, %v820_v48 }
 0x4ea   :  { %4298 = vmatmul.mubr.msk.f32.vlgmr.msra.gmra.mxu1 %vm401_vm2, %v821_v49 }
 0x4eb   :  { %4301 = vmatpush3.xpose.msk.msra.mxu1 %vm401_vm2, %v4886_v12  ;;  %4302 = vmatprep.mubr.msk.f32.mxu1 %vm4615_vm1, %v4614_v42 }
 0x4ec   :  { %4310 = vmatprep.subr.mxu1 %v4614_v42 }
 0x4ed   :  { %v4294_v52 = vpop.f32.mrf.mxu0 }
 0x4ee   :  { %v1002_v53 = vadd.f32 %v4294_v52, %v3885_v50  ;;  %4303 = vmatmul.mubr.msk.f32.vlgmr.msra.gmra.mxu1 %vm401_vm2, %v826_v51 }
 0x4ef   :  { %v996_v54 = vpop.f32.mrf.mxu0  ;;  %4312 = vmatprep.mubr.msk.f32.mxu1 %vm4615_vm1, %v4614_v42 }
 0x4f0   :  { %v997_v55 = vadd.f32 %v3885_v50, %v996_v54  ;;  %4311 = vmatpush3.msra.mxu1 %v1002_v53  ;;  %v1551_v53 = vld [vmem:[%s5488_s15 + $0x10] sm:$0xff]  ;;  %v1550_v54 = vld [vmem:[%s5488_s15 + $0x8] sm:$0xff] }
 0x4f1   :  { %4322 = vmatprep.subr.mxu1 %v740_v14 }
 0x4f2   :  { %4306 = vmatpush3.msra.mxu0 %v997_v55  ;;  %v1549_v55 = vld [vmem:[%s5488_s15] sm:$0xff] }
 0x4f3   :  { %4315 = vmatprep.subr.mxu0 %v3895_v22 }
 0x5aa   :  { %v1077_v56 = vpop.f32.mrf.mxu1 }
 0x5ab   :  { %v1157_v57 = vmul.f32 0.25, %v1077_v56 }
 0x5ac   :  { %v4299_v58 = vpop.f32.mrf.mxu1 }
 0x5ad   :  { %v1159_v59 = vadd.f32 %v4872_v63, %v1157_v57 }
 0x5ae   :  { %v1153_v60 = vpop.f32.mrf.mxu1 }
 0x5af   :  { %v1158_v61 = vmul.f32 0.25, %v1153_v60  ;;  %v1161_v62 = vsel %vm570_vm3, %v1159_v59, -inf }
 0x5b0   :  { %1162 = vmax.xlane.f32.xlu0 %v1161_v62  ;;  %v4304_v0 = vpop.f32.mrf.mxu1 }
 0x5b1   :  { %v1160_v1 = vadd.f32 %v4878_v4, %v1158_v61  ;;  %v3901_v0 = vld [vmem:[%s5486_s13] ss:$0 sm:$0xff] }
 0x5b3   :  { %v1164_v2 = vsel %vm570_vm3, %v1160_v1, -inf }
 0x5b4   :  { %1165 = vmax.xlane.f32.xlu1 %v1164_v2 }
 0x639   :  { %v1163_v3 = vpop.xlane.xlu0 %1162 }
 0x63a   :  { %v1167_v5 = vsub.f32 %v1159_v59, %v1163_v3 }
 0x63c   :  { %v1169_v6 = vmul.f32 1.442695, %v1167_v5 }
 0x63d   :  { %v1166_v7 = vpop.xlane.xlu1 %1165 }
 0x63e   :  { %4542 = vpow2.f32 %v1169_v6  ;;  %v1168_v8 = vsub.f32 %v1160_v1, %v1166_v7  ;;  %v3902_v6 = vld [vmem:[%s5487_s14] ss:$0 sm:$0xff] }
 0x640   :  { %v1171_v9 = vmul.f32 1.442695, %v1168_v8 }
 0x642   :  { %4544 = vpow2.f32 %v1171_v9 }
 0x64b   :  { %v4543_v10 = vpop.eup %4542 }
 0x64c   :  { %v1173_v11 = vsel %vm570_vm3, %v4543_v10, 0.0 }
 0x64d   :  { %1174 = vadd.xlane.f32.xlu0 %v1173_v11  ;;  %v1665_v11 = vld [vmem:[%s5490_s17 + $0x30] sm:$0xff] }
 0x64f   :  { %v4545_v12 = vpop.eup %4544 }
 0x650   :  { %v1176_v13 = vsel %vm570_vm3, %v4545_v12, 0.0 }
 0x651   :  { %1177 = vadd.xlane.f32.xlu1 %v1176_v13  ;;  %v1663_v13 = vld [vmem:[%s5490_s17 + $0x20] sm:$0xff] }
 0x6d6   :  { %v1175_v15 = vpop.xlane.xlu0 %1174 }
 0x6d7   :  { %4546 = vrcp.f32 %v1175_v15  ;;  %v1661_v15 = vld [vmem:[%s5490_s17 + $0x10] sm:$0xff] }
 0x6da   :  { %v1178_v16 = vpop.xlane.xlu1 %1177 }
 0x6db   :  { %4548 = vrcp.f32 %v1178_v16  ;;  %v1660_v16 = vld [vmem:[%s5490_s17 + $0x8] sm:$0xff] }
 0x6e4   :  { %v4547_v17 = vpop.eup %4546 }
 0x6e5   :  { %v1181_v18 = vmul.f32 %v4547_v17, %v4543_v10  ;;  %v1666_v10 = vld [vmem:[%s5490_s17 + $0x38] sm:$0xff]  ;;  %v1659_v17 = vld [vmem:[%s5490_s17] sm:$0xff] }
 0x6e7   :  { %4308 = vmatmul.mubr.msk.f32.vlgmr.msra.gmra.mxu0 %vm570_vm3, %v1181_v18  ;;  %v3903_v18 = vld [vmem:[%s5489_s16] ss:$0 sm:$0xff] }
 0x6e8   :  { %v4549_v19 = vpop.eup %4548  ;;  %4316 = vmatpush3.msra.mxu0 %v3895_v22 }
 0x6e9   :  { %v1182_v20 = vmul.f32 %v4549_v19, %v4545_v12  ;;  %4317 = vmatprep.subr.mxu0 %v3894_v23  ;;  %v1664_v12 = vld [vmem:[%s5490_s17 + $0x28] sm:$0xff] }
 0x6ea   :  { %4318 = vmatpush3.msra.mxu0 %v3894_v23 }
 0x6eb   :  { %4313 = vmatmul.mubr.msk.f32.vlgmr.msra.gmra.mxu1 %vm570_vm3, %v1182_v20 }
 0x6ec   :  { %4323 = vmatpush3.msra.mxu1 %v740_v14  ;;  %4326 = vmatprep.mubr.msk.f32.mxu1 %vm401_vm2, %v662_v41  ;;  %v1662_v14 = vld [vmem:[%s5490_s17 + $0x18] sm:$0xff] }
 0x6ed   :  { %4324 = vmatprep.subr.mxu1 %v739_v21 }
 0x6ee   :  { %4325 = vmatpush3.msra.mxu1 %v739_v21 }
 0x6ef   :  { %4327 = vmatmul.mubr.msk.f32.vlgmr.msra.gmra.mxu1 %vm401_vm2, %v4932_v44  ;;  %4340 = vmatprep.subr.mxu1 %v1666_v10 }
 0x6f0   :  { %4341 = vmatpush3.msra.mxu1 %v1666_v10 }
 0x6f1   :  { %4342 = vmatprep.subr.mxu1 %v1665_v11 }
 0x6f2   :  { %4343 = vmatpush3.msra.mxu1 %v1665_v11 }
 0x6f3   :  { %4344 = vmatprep.subr.mxu1 %v1664_v12 }
 0x6f4   :  { %4345 = vmatpush3.msra.mxu1 %v1664_v12 }
 0x6f5   :  { %4346 = vmatprep.subr.mxu1 %v1663_v13 }
 0x6f6   :  { %4347 = vmatpush3.msra.mxu1 %v1663_v13 }
 0x6f7   :  { %4348 = vmatprep.subr.mxu1 %v1662_v14 }
 0x6f8   :  { %4349 = vmatpush3.msra.mxu1 %v1662_v14 }
 0x6f9   :  { %4350 = vmatprep.subr.mxu1 %v1661_v15 }
 0x6fa   :  { %4351 = vmatpush3.msra.mxu1 %v1661_v15  ;;  %v3909_v15 = vld [vmem:[%s5492_s19] ss:$0 sm:$0xff] }
 0x6fb   :  { %4352 = vmatprep.subr.mxu1 %v1660_v16 }
 0x6fc   :  { %4353 = vmatpush3.msra.mxu1 %v1660_v16 }
 0x6fd   :  { %4354 = vmatprep.subr.mxu1 %v1659_v17 }
 0x6fe   :  { %4355 = vmatpush3.msra.mxu1 %v1659_v17 }
 0x7a7   :  { %v1252_v24 = vpop.f32.mrf.mxu0 }
 0x7a8   :  { %4319 = vmatprep.mubr.msk.f32.mxu0 %vm401_vm2, %v1252_v24 }
 0x7a9   :  { %v4309_v25 = vpop.f32.mrf.mxu0 }
 0x7ab   :  { %v1325_v26 = vpop.f32.mrf.mxu1 }
 0x7ac   :  { %4320 = vmatmul.mubr.msk.f32.vlgmr.msra.gmra.mxu0 %vm401_vm2, %v1325_v26 }
 0x7ad   :  { %v4314_v27 = vpop.f32.mrf.mxu1 }
 0x7af   :  { %v4328_v28 = vpop.f32.mrf.mxu1 }
 0x7b1   :  { %v1485_v33 = vpop.f32.mrf.mxu1 }
 0x86c   :  { %v4321_v29 = vpop.f32.mrf.mxu0 }
 0x86d   :  { %v1491_v32 = vadd.f32 %v4328_v28, %v4321_v29 }
 0x86e   :  { %v1404_v35 = vpop.f32.mrf.mxu0 }
 0x86f   :  { %v1502_v36 = vadd.f32 %v3900_v30, %v1491_v32  ;;  %v1486_v37 = vadd.f32 %v1485_v33, %v1404_v35 }
 0x871   :  { %v1501_v38 = vadd.f32 %v3900_v30, %v1486_v37  ;;  %v1504_v39 = vadd.f32 %v1502_v36, %v4792_v34 }
 0x873   :  { %v1510_v40 = vsel %vm91_vm0, %v1504_v39, 0.0  ;;  %v1503_v41 = vadd.f32 %v1501_v38, %v4788_v31  ;;  %v1552_v31 = vld [vmem:[%s5488_s15 + $0x18] sm:$0xff] }
 0x874   :  { %1511 = vadd.xlane.f32.xlu1 %v1510_v40  ;;  %4329 = vmatprep.subr.mxu0 %v1552_v31 }
 0x875   :  { %v1507_v43 = vsel %vm91_vm0, %v1503_v41, 0.0  ;;  %4330 = vmatpush3.msra.mxu0 %v1552_v31 }
 0x876   :  { %1508 = vadd.xlane.f32.xlu0 %v1507_v43  ;;  %4331 = vmatprep.subr.mxu0 %v1551_v53 }
 0x877   :  { %4332 = vmatpush3.msra.mxu0 %v1551_v53 }
 0x878   :  { %4333 = vmatprep.subr.mxu0 %v1550_v54 }
 0x879   :  { %4334 = vmatpush3.msra.mxu0 %v1550_v54 }
 0x87a   :  { %4335 = vmatprep.subr.mxu0 %v1549_v55 }
 0x87b   :  { %4336 = vmatpush3.msra.mxu0 %v1549_v55 }
 0x8fd   :  { %v1512_v44 = vpop.xlane.xlu1 %1511 }
 0x8fe   :  { %v1514_v45 = vmul.f32 0.03125, %v1512_v44  ;;  %v3906_v44 = vld [vmem:[%s5491_s18] ss:$0 sm:$0xff] }
 0x8ff   :  { %v1509_v46 = vpop.xlane.xlu0 %1508 }
 0x900   :  { %v1516_v47 = vsub.f32 %v1504_v39, %v1514_v45  ;;  %v1513_v48 = vmul.f32 0.03125, %v1509_v46 }
 0x902   :  { %v1515_v49 = vsub.f32 %v1503_v41, %v1513_v48  ;;  %v1518_v50 = vmul.f32 %v1516_v47, %v1516_v47 }
 0x904   :  { %v1522_v51 = vsel %vm91_vm0, %v1518_v50, 0.0  ;;  %v1517_v52 = vmul.f32 %v1515_v49, %v1515_v49 }
 0x905   :  { %1523 = vadd.xlane.f32.xlu1 %v1522_v51 }
 0x906   :  { %v1519_v34 = vsel %vm91_vm0, %v1517_v52, 0.0 }
 0x907   :  { %1520 = vadd.xlane.f32.xlu0 %v1519_v34 }
 0x98e   :  { %v1524_v56 = vpop.xlane.xlu1 %1523 }
 0x98f   :  { %v1526_v57 = vmul.f32 0.03125, %v1524_v56 }
 0x990   :  { %v1521_v58 = vpop.xlane.xlu0 %1520 }
 0x991   :  { %v1528_v59 = vadd.f32 1e-12, %v1526_v57  ;;  %v1525_v60 = vmul.f32 0.03125, %v1521_v58 }
 0x993   :  { %4550 = vrsqrt.f32 %v1528_v59  ;;  %v1527_v61 = vadd.f32 1e-12, %v1525_v60 }
 0x995   :  { %4552 = vrsqrt.f32 %v1527_v61  ;;  %v3914_v61 = vld [vmem:[%s5523_s0 + $0x58] sm:$0xff] }
 0x996   :  { %4359 = vmatprep.subr.mxu0 %v3914_v61 }
 0x9a0   :  { %v4551_v62 = vpop.eup %4550 }
 0x9a1   :  { %v1532_v1 = vmul.f32 %v4551_v62, %v1516_v47  ;;  %v3930_v62 = vld [vmem:[%s5527_s30 + $0x58] sm:$0xff] }
 0x9a2   :  { %v4553_v2 = vpop.eup %4552  ;;  %4381 = vmatprep.subr.mxu1 %v3930_v62 }
 0x9a3   :  { %v1531_v3 = vmul.f32 %v4553_v2, %v1515_v49  ;;  %v1540_v5 = vmul.f32 %v3901_v0, %v1532_v1  ;;  %v3929_v1 = vld [vmem:[%s5527_s30 + $0x50] sm:$0xff]  ;;  %v3912_v2 = vld [vmem:[%s5523_s0 + $0x48] sm:$0xff] }
 0x9a5   :  { %v1539_v7 = vmul.f32 %v3901_v0, %v1531_v3  ;;  %v1548_v9 = vadd.f32 %v3902_v6, %v1540_v5  ;;  %v3913_v0 = vld [vmem:[%s5523_s0 + $0x50] sm:$0xff]  ;;  %v3928_v3 = vld [vmem:[%s5527_s30 + $0x48] sm:$0xff]  ;;  %v3911_v5 = vld [vmem:[%s5523_s0 + $0x40] sm:$0xff] }
 0x9a7   :  { %v5001_v8 = vadd.f32 %v3902_v6, %v1539_v7  ;;  %v3927_v6 = vld [vmem:[%s5527_s30 + $0x40] sm:$0xff]  ;;  %v3922_v7 = vld [vmem:[%s5524_s4 + $0x58] sm:$0xff] }
 0x9a9   :  { %4337 = vmatprep.mubr.msk.f32.mxu0 %vm91_vm0, %v5001_v8 }
 0x9aa   :  { %4338 = vmatmul.mubr.msk.f32.vlgmr.msra.gmra.mxu0 %vm91_vm0, %v1548_v9 }
 0x9ab   :  { %4360 = vmatpush3.msra.mxu0 %v3914_v61 }
 0x9ac   :  { %4361 = vmatprep.subr.mxu0 %v3913_v0 }
 0x9ad   :  { %4362 = vmatpush3.msra.mxu0 %v3913_v0  ;;  %v3954_v0 = vld [vmem:[%s5524_s4 + $0x78] sm:$0xff] }
 0x9ae   :  { %4363 = vmatprep.subr.mxu0 %v3912_v2 }
 0x9af   :  { %4364 = vmatpush3.msra.mxu0 %v3912_v2 }
 0x9b0   :  { %4365 = vmatprep.subr.mxu0 %v3911_v5 }
 0x9b1   :  { %4366 = vmatpush3.msra.mxu0 %v3911_v5 }
 0x9b2   :  { %4370 = vmatprep.subr.mxu0 %v3922_v7 }
 0xa6a   :  { %v4339_v19 = vpop.f32.mrf.mxu0 }
 0xa6b   :  { %v1638_v20 = vadd.f32 %v4339_v19, %v3903_v18 }
 0xa6c   :  { %v1632_v21 = vpop.f32.mrf.mxu0 }
 0xa6d   :  { %v1644_v22 = vmul.f32 0.044715, %v1638_v20  ;;  %v1633_v23 = vadd.f32 %v3903_v18, %v1632_v21  ;;  %v1642_v40 = vmul.f32 0.5, %v1638_v20 }
 0xa6f   :  { %v1646_v24 = vmul.f32 %v1644_v22, %v1638_v20  ;;  %v1643_v25 = vmul.f32 0.044715, %v1633_v23  ;;  %v1641_v38 = vmul.f32 0.5, %v1633_v23 }
 0xa71   :  { %v1648_v26 = vmul.f32 %v1646_v24, %v1638_v20  ;;  %v1645_v27 = vmul.f32 %v1643_v25, %v1633_v23  ;;  %v3921_v24 = vld [vmem:[%s5524_s4 + $0x50] sm:$0xff]  ;;  %v3920_v25 = vld [vmem:[%s5524_s4 + $0x48] sm:$0xff] }
 0xa73   :  { %v1650_v28 = vadd.f32 %v1648_v26, %v1638_v20  ;;  %v1647_v29 = vmul.f32 %v1645_v27, %v1633_v23  ;;  %v3910_v20 = vld [vmem:[%s5493_s20] ss:$0 sm:$0xff] }
 0xa74   :  { %v3919_v26 = vld [vmem:[%s5524_s4 + $0x40] sm:$0xff] }
 0xa75   :  { %v1652_v30 = vmul.f32 0.7978846, %v1650_v28  ;;  %v1649_v32 = vadd.f32 %v1647_v29, %v1633_v23  ;;  %v3924_v29 = vld [vmem:[%s5528_s2 + $0x2] ss:$0 sm:$0xff] }
 0xa77   :  { %4554 = vtanh.f32 %v1652_v30  ;;  %v1651_v33 = vmul.f32 0.7978846, %v1649_v32 }
 0xa79   :  { %4556 = vtanh.f32 %v1651_v33  ;;  %v3916_v33 = vld [vmem:[%s5529_s8 + $0x2] ss:$0 sm:$0xff] }
 0xa84   :  { %v4555_v35 = vpop.eup %4554 }
 0xa85   :  { %v1656_v37 = vadd.f32 1.0, %v4555_v35 }
 0xa86   :  { %v4557_v36 = vpop.eup %4556 }
 0xa87   :  { %v1655_v39 = vadd.f32 1.0, %v4557_v36  ;;  %v1658_v43 = vmul.f32 %v1656_v37, %v1642_v40  ;;  %v3932_v36 = vld [vmem:[%s5530_s28 + $0x2] ss:$0 sm:$0xff] }
 0xa89   :  { %v1657_v41 = vmul.f32 %v1655_v39, %v1641_v38 }
 0xa8b   :  { %4356 = vmatprep.mubr.msk.f32.mxu1 %vm1674_vm4, %v1657_v41 }
 0xa8c   :  { %4357 = vmatmul.mubr.msk.f32.vlgmr.msra.gmra.mxu1 %vm1674_vm4, %v1658_v43 }
 0xa8d   :  { %4382 = vmatpush3.msra.mxu1 %v3930_v62 }
 0xa8e   :  { %4383 = vmatprep.subr.mxu1 %v3929_v1 }
 0xa8f   :  { %4384 = vmatpush3.msra.mxu1 %v3929_v1  ;;  %v3946_v1 = vld [vmem:[%s5523_s0 + $0x78] sm:$0xff] }
 0xa90   :  { %4385 = vmatprep.subr.mxu1 %v3928_v3 }
 0xa91   :  { %4386 = vmatpush3.msra.mxu1 %v3928_v3 }
 0xa92   :  { %4387 = vmatprep.subr.mxu1 %v3927_v6 }
 0xa93   :  { %4388 = vmatpush3.msra.mxu1 %v3927_v6 }
 0xa94   :  { %4397 = vmatprep.subr.mxu1 %v4614_v42 }
 0xb4c   :  { %v4358_v45 = vpop.f32.mrf.mxu1 }
 0xb4d   :  { %v1753_v46 = vadd.f32 %v4358_v45, %v3906_v44 }
 0xb4e   :  { %v1747_v47 = vpop.f32.mrf.mxu1 }
 0xb4f   :  { %v1748_v48 = vadd.f32 %v3906_v44, %v1747_v47  ;;  %v1757_v49 = vadd.f32 %v1753_v46, %v1548_v9 }
 0xb51   :  { %v1763_v50 = vsel %vm91_vm0, %v1757_v49, 0.0  ;;  %v1756_v51 = vadd.f32 %v1748_v48, %v5001_v8 }
 0xb52   :  { %1764 = vadd.xlane.f32.xlu1 %v1763_v50 }
 0xb53   :  { %v1760_v52 = vsel %vm91_vm0, %v1756_v51, 0.0 }
 0xb54   :  { %1761 = vadd.xlane.f32.xlu0 %v1760_v52 }
 0xbdb   :  { %v1765_v34 = vpop.xlane.xlu1 %1764 }
 0xbdc   :  { %v1767_v31 = vmul.f32 0.03125, %v1765_v34 }
 0xbdd   :  { %v1762_v53 = vpop.xlane.xlu0 %1761 }
 0xbde   :  { %v1769_v54 = vsub.f32 %v1757_v49, %v1767_v31  ;;  %v1766_v55 = vmul.f32 0.03125, %v1762_v53 }
 0xbe0   :  { %v1768_v56 = vsub.f32 %v1756_v51, %v1766_v55  ;;  %v1771_v57 = vmul.f32 %v1769_v54, %v1769_v54 }
 0xbe2   :  { %v1775_v58 = vsel %vm91_vm0, %v1771_v57, 0.0  ;;  %v1770_v59 = vmul.f32 %v1768_v56, %v1768_v56 }
 0xbe3   :  { %1776 = vadd.xlane.f32.xlu1 %v1775_v58 }
 0xbe4   :  { %v1772_v60 = vsel %vm91_vm0, %v1770_v59, 0.0 }
 0xbe5   :  { %1773 = vadd.xlane.f32.xlu0 %v1772_v60 }
 0xc6c   :  { %v1777_v8 = vpop.xlane.xlu1 %1776 }
 0xc6d   :  { %v1779_v9 = vmul.f32 0.03125, %v1777_v8  ;;  %v3953_v8 = vld [vmem:[%s5524_s4 + $0x70] sm:$0xff] }
 0xc6e   :  { %v1774_v10 = vpop.xlane.xlu0 %1773 }
 0xc6f   :  { %v1781_v11 = vadd.f32 1e-12, %v1779_v9  ;;  %v1778_v12 = vmul.f32 0.03125, %v1774_v10  ;;  %v3945_v10 = vld [vmem:[%s5523_s0 + $0x70] sm:$0xff] }
 0xc71   :  { %4558 = vrsqrt.f32 %v1781_v11  ;;  %v1780_v13 = vadd.f32 1e-12, %v1778_v12  ;;  %v3952_v11 = vld [vmem:[%s5524_s4 + $0x68] sm:$0xff] }
 0xc72   :  { %v3944_v12 = vld [vmem:[%s5523_s0 + $0x68] sm:$0xff] }
 0xc73   :  { %4560 = vrsqrt.f32 %v1780_v13  ;;  %v3951_v13 = vld [vmem:[%s5524_s4 + $0x60] sm:$0xff] }
 0xc7e   :  { %v4559_v14 = vpop.eup %4558 }
 0xc7f   :  { %v1785_v16 = vmul.f32 %v4559_v14, %v1769_v54  ;;  %v3943_v14 = vld [vmem:[%s5523_s0 + $0x60] sm:$0xff] }
 0xc80   :  { %v4561_v17 = vpop.eup %4560 }
 0xc81   :  { %v1784_v18 = vmul.f32 %v4561_v17, %v1768_v56  ;;  %v1793_v19 = vmul.f32 %v3909_v15, %v1785_v16  ;;  %v3961_v16 = vld [vmem:[%s5527_s30 + $0x70] sm:$0xff]  ;;  %v3960_v17 = vld [vmem:[%s5527_s30 + $0x68] sm:$0xff] }
 0xc83   :  { %v1792_v21 = vmul.f32 %v3909_v15, %v1784_v18  ;;  %v5079_v23 = vadd.f32 %v3910_v20, %v1793_v19  ;;  %v3962_v15 = vld [vmem:[%s5527_s30 + $0x78] sm:$0xff]  ;;  %v3959_v18 = vld [vmem:[%s5527_s30 + $0x60] sm:$0xff] }
 0xc85   :  { %v5077_v22 = vadd.f32 %v3910_v20, %v1792_v21 }
 0xc87   :  { %4367 = vmatprep.mubr.msk.f32.mxu0 %vm91_vm0, %v5077_v22  ;;  %4389 = vmatprep.mubr.msk.f32.mxu1 %vm91_vm0, %v5077_v22 }
 0xc88   :  { %4368 = vmatmul.mubr.msk.f32.vlgmr.msra.gmra.mxu0 %vm91_vm0, %v5079_v23  ;;  %4390 = vmatmul.mubr.msk.f32.vlgmr.msra.gmra.mxu1 %vm91_vm0, %v5079_v23 }
 0xc89   :  { %4371 = vmatpush3.msra.mxu0 %v3922_v7  ;;  %4378 = vmatprep.mubr.msk.f32.mxu0 %vm91_vm0, %v5077_v22 }
 0xc8a   :  { %4372 = vmatprep.subr.mxu0 %v3921_v24  ;;  %4399 = vmatprep.mubr.msk.f32.mxu1 %vm4615_vm1, %v4614_v42 }
 0xc8b   :  { %4373 = vmatpush3.msra.mxu0 %v3921_v24 }
 0xc8c   :  { %4374 = vmatprep.subr.mxu0 %v3920_v25 }
 0xc8d   :  { %4375 = vmatpush3.msra.mxu0 %v3920_v25 }
 0xc8e   :  { %4376 = vmatprep.subr.mxu0 %v3919_v26 }
 0xc8f   :  { %4377 = vmatpush3.msra.mxu0 %v3919_v26 }
 0xc90   :  { %4379 = vmatmul.mubr.msk.f32.vlgmr.msra.gmra.mxu0 %vm91_vm0, %v5079_v23  ;;  %4392 = vmatprep.subr.mxu0 %v4614_v42 }
 0xc91   :  { %4394 = vmatprep.mubr.msk.f32.mxu0 %vm4615_vm1, %v4614_v42 }
 0xd48   :  { %v4369_v27 = vpop.f32.mrf.mxu0  ;;  %v4391_v30 = vpop.f32.mrf.mxu1 }
 0xd49   :  { %v1893_v39 = vadd.f32 %v4369_v27, %v3916_v33  ;;  %v2069_v41 = vadd.f32 %v4391_v30, %v3932_v36  ;;  %v3956_v27 = vld [vmem:[%s5528_s2 + $0x3] ss:$0 sm:$0xff] }
 0xd4a   :  { %v1887_v28 = vpop.f32.mrf.mxu0  ;;  %v2063_v40 = vpop.f32.mrf.mxu1 }
 0xd4b   :  { %v1888_v43 = vadd.f32 %v3916_v33, %v1887_v28  ;;  %v2064_v44 = vadd.f32 %v3932_v36, %v2063_v40  ;;  %v3964_v36 = vld [vmem:[%s5530_s28 + $0x3] ss:$0 sm:$0xff] }
 0xd50   :  { %v4380_v32 = vpop.f32.mrf.mxu0 }
 0xd51   :  { %v1981_v35 = vadd.f32 %v4380_v32, %v3924_v29 }
 0xd52   :  { %v1975_v37 = vpop.f32.mrf.mxu0 }
 0xd53   :  { %v1976_v38 = vadd.f32 %v3924_v29, %v1975_v37  ;;  %4398 = vmatpush3.xpose.msk.msra.mxu1 %vm401_vm2, %v1981_v35  ;;  %v3948_v29 = vld [vmem:[%s5529_s8 + $0x3] ss:$0 sm:$0xff] }
 0xd54   :  { %4407 = vmatprep.subr.mxu1 %v4614_v42 }
 0xd55   :  { %4393 = vmatpush3.xpose.msk.msra.mxu0 %vm401_vm2, %v1976_v38 }
 0xd56   :  { %4400 = vmatmul.mubr.msk.f32.vlgmr.msra.gmra.mxu1 %vm401_vm2, %v1893_v39  ;;  %4402 = vmatprep.subr.mxu0 %v4614_v42 }
 0xd57   :  { %4408 = vmatpush3.msra.mxu1 %v2069_v41  ;;  %4409 = vmatprep.mubr.msk.f32.mxu1 %vm4615_vm1, %v4614_v42 }
 0xd58   :  { %4395 = vmatmul.mubr.msk.f32.vlgmr.msra.gmra.mxu0 %vm401_vm2, %v1888_v43  ;;  %4423 = vmatprep.subr.mxu1 %v3954_v0 }
 0xd59   :  { %4403 = vmatpush3.msra.mxu0 %v2064_v44  ;;  %4404 = vmatprep.mubr.msk.f32.mxu0 %vm4615_vm1, %v4614_v42 }
 0xd5a   :  { %4412 = vmatprep.subr.mxu0 %v3946_v1 }
 0xe16   :  { %v2220_v45 = vpop.f32.mrf.mxu1 }
 0xe17   :  { %v2225_v46 = vmul.f32 0.25, %v2220_v45 }
 0xe18   :  { %v2144_v47 = vpop.f32.mrf.mxu0  ;;  %v4401_v48 = vpop.f32.mrf.mxu1 }
 0xe19   :  { %v2224_v49 = vmul.f32 0.25, %v2144_v47  ;;  %v2227_v50 = vadd.f32 %v4878_v4, %v2225_v46 }
 0xe1a   :  { %v4396_v51 = vpop.f32.mrf.mxu0 }
 0xe1b   :  { %v2231_v52 = vsel %vm570_vm3, %v2227_v50, -inf  ;;  %v2226_v34 = vadd.f32 %v4872_v63, %v2224_v49 }
 0xe1c   :  { %2232 = vmax.xlane.f32.xlu0 %v2231_v52 }
 0xe1d   :  { %v2228_v31 = vsel %vm570_vm3, %v2226_v34, -inf }
 0xe1e   :  { %2229 = vmax.xlane.f32.xlu1 %v2228_v31 }
 0xea5   :  { %v2233_v53 = vpop.xlane.xlu0 %2232 }
 0xea6   :  { %v2235_v54 = vsub.f32 %v2227_v50, %v2233_v53 }
 0xea7   :  { %v2230_v55 = vpop.xlane.xlu1 %2229 }
 0xea8   :  { %v2238_v56 = vmul.f32 1.442695, %v2235_v54  ;;  %v2234_v57 = vsub.f32 %v2226_v34, %v2230_v55 }
 0xeaa   :  { %4562 = vpow2.f32 %v2238_v56  ;;  %v2236_v58 = vmul.f32 1.442695, %v2234_v57 }
 0xeac   :  { %4564 = vpow2.f32 %v2236_v58 }
 0xeb7   :  { %v4563_v59 = vpop.eup %4562 }
 0xeb8   :  { %v2243_v60 = vsel %vm570_vm3, %v4563_v59, 0.0 }
 0xeb9   :  { %v4565_v61 = vpop.eup %4564  ;;  %2244 = vadd.xlane.f32.xlu0 %v2243_v60 }
 0xeba   :  { %v2240_v62 = vsel %vm570_vm3, %v4565_v61, 0.0 }
 0xebb   :  { %2241 = vadd.xlane.f32.xlu1 %v2240_v62 }
 0xf42   :  { %v2245_v2 = vpop.xlane.xlu0 %2244 }
 0xf43   :  { %4566 = vrcp.f32 %v2245_v2 }
 0xf44   :  { %v2242_v3 = vpop.xlane.xlu1 %2241 }
 0xf45   :  { %4568 = vrcp.f32 %v2242_v3  ;;  %v3941_v3 = vld [vmem:[%s5532_s29 + $0x20] sm:$0xff] }
 0xf50   :  { %v4567_v5 = vpop.eup %4566 }
 0xf51   :  { %v2249_v6 = vmul.f32 %v4567_v5, %v4563_v59  ;;  %v3974_v5 = vld [vmem:[%s5532_s29 + $0x38] sm:$0xff] }
 0xf52   :  { %v4569_v7 = vpop.eup %4568 }
 0xf53   :  { %4410 = vmatmul.mubr.msk.f32.vlgmr.msra.gmra.mxu1 %vm570_vm3, %v2249_v6  ;;  %v2248_v9 = vmul.f32 %v4569_v7, %v4565_v61  ;;  %v3973_v6 = vld [vmem:[%s5532_s29 + $0x30] sm:$0xff] }
 0xf54   :  { %4424 = vmatpush3.msra.mxu1 %v3954_v0  ;;  %4431 = vmatprep.mubr.msk.f32.mxu1 %vm91_vm0, %v5077_v22 }
 0xf55   :  { %4425 = vmatprep.subr.mxu1 %v3953_v8  ;;  %4405 = vmatmul.mubr.msk.f32.vlgmr.msra.gmra.mxu0 %vm570_vm3, %v2248_v9 }
 0xf56   :  { %4413 = vmatpush3.msra.mxu0 %v3946_v1  ;;  %4426 = vmatpush3.msra.mxu1 %v3953_v8 }
 0xf57   :  { %4414 = vmatprep.subr.mxu0 %v3945_v10  ;;  %4420 = vmatprep.mubr.msk.f32.mxu0 %vm91_vm0, %v5077_v22 }
 0xf58   :  { %4427 = vmatprep.subr.mxu1 %v3952_v11  ;;  %4415 = vmatpush3.msra.mxu0 %v3945_v10 }
 0xf59   :  { %4428 = vmatpush3.msra.mxu1 %v3952_v11  ;;  %4416 = vmatprep.subr.mxu0 %v3944_v12 }
 0xf5a   :  { %4429 = vmatprep.subr.mxu1 %v3951_v13  ;;  %4417 = vmatpush3.msra.mxu0 %v3944_v12 }
 0xf5b   :  { %4430 = vmatpush3.msra.mxu1 %v3951_v13  ;;  %4418 = vmatprep.subr.mxu0 %v3943_v14  ;;  %v3980_v13 = vld [vmem:[%s5485_s12 + $0x1] ss:$0 sm:$0xff] }
 0xf5c   :  { %4432 = vmatmul.mubr.msk.f32.vlgmr.msra.gmra.mxu1 %vm91_vm0, %v5079_v23  ;;  %4419 = vmatpush3.msra.mxu0 %v3943_v14 }
 0xf5d   :  { %4421 = vmatmul.mubr.msk.f32.vlgmr.msra.gmra.mxu0 %vm91_vm0, %v5079_v23  ;;  %4434 = vmatprep.subr.mxu0 %v3962_v15 }
 0xf5e   :  { %4435 = vmatpush3.msra.mxu0 %v3962_v15  ;;  %4442 = vmatprep.mubr.msk.f32.mxu0 %vm91_vm0, %v5077_v22 }
 0xf5f   :  { %4436 = vmatprep.subr.mxu0 %v3961_v16  ;;  %4445 = vmatprep.subr.mxu1 %v4614_v42 }
 0xf60   :  { %4437 = vmatpush3.msra.mxu0 %v3961_v16  ;;  %4447 = vmatprep.mubr.msk.f32.mxu1 %vm4615_vm1, %v4614_v42 }
 0xf61   :  { %4438 = vmatprep.subr.mxu0 %v3960_v17 }
 0xf62   :  { %4439 = vmatpush3.msra.mxu0 %v3960_v17 }
 0xf63   :  { %4440 = vmatprep.subr.mxu0 %v3959_v18 }
 0xf64   :  { %4441 = vmatpush3.msra.mxu0 %v3959_v18 }
 0xf65   :  { %4443 = vmatmul.mubr.msk.f32.vlgmr.msra.gmra.mxu0 %vm91_vm0, %v5079_v23  ;;  %4455 = vmatprep.subr.mxu0 %v4614_v42 }
 0xf66   :  { %4457 = vmatprep.mubr.msk.f32.mxu0 %vm4615_vm1, %v4614_v42 }
0x1013   :  { %v5188_v19 = vpop.f32.mrf.mxu1 }
0x1015   :  { %v5190_v20 = vpop.f32.mrf.mxu0  ;;  %v4411_v21 = vpop.f32.mrf.mxu1 }
0x1017   :  { %v4406_v24 = vpop.f32.mrf.mxu0 }
0x101c   :  { %v4433_v25 = vpop.f32.mrf.mxu1 }
0x101d   :  { %v4422_v26 = vpop.f32.mrf.mxu0  ;;  %v2572_v35 = vadd.f32 %v4433_v25, %v3956_v27 }
0x101e   :  { %v2566_v28 = vpop.f32.mrf.mxu1  ;;  %v2484_v38 = vadd.f32 %v4422_v26, %v3948_v29 }
0x101f   :  { %v2567_v30 = vadd.f32 %v3956_v27, %v2566_v28  ;;  %v2478_v32 = vpop.f32.mrf.mxu0 }
0x1020   :  { %v2479_v33 = vadd.f32 %v3948_v29, %v2478_v32 }
0x1021   :  { %4446 = vmatpush3.xpose.msk.msra.mxu1 %vm401_vm2, %v2567_v30 }
0x1022   :  { %4450 = vmatprep.subr.mxu1 %v4614_v42 }
0x1024   :  { %4448 = vmatmul.mubr.msk.f32.vlgmr.msra.gmra.mxu1 %vm401_vm2, %v2479_v33 }
0x1025   :  { %4451 = vmatpush3.xpose.msk.msra.mxu1 %vm401_vm2, %v2572_v35  ;;  %v4444_v37 = vpop.f32.mrf.mxu0  ;;  %4452 = vmatprep.mubr.msk.f32.mxu1 %vm4615_vm1, %v4614_v42 }
0x1026   :  { %v2660_v39 = vadd.f32 %v4444_v37, %v3964_v36  ;;  %4460 = vmatprep.subr.mxu1 %v4614_v42  ;;  %v3987_v37 = vld [vmem:[%s5488_s15 + $0x30] sm:$0xff] }
0x1027   :  { %v2654_v40 = vpop.f32.mrf.mxu0 }
0x1028   :  { %v2655_v41 = vadd.f32 %v3964_v36, %v2654_v40  ;;  %4453 = vmatmul.mubr.msk.f32.vlgmr.msra.gmra.mxu1 %vm401_vm2, %v2484_v38  ;;  %v3986_v38 = vld [vmem:[%s5488_s15 + $0x28] sm:$0xff] }
0x1029   :  { %4461 = vmatpush3.msra.mxu1 %v2660_v39  ;;  %4462 = vmatprep.mubr.msk.f32.mxu1 %vm4615_vm1, %v4614_v42  ;;  %v3985_v39 = vld [vmem:[%s5488_s15 + $0x20] sm:$0xff] }
0x102a   :  { %4456 = vmatpush3.msra.mxu0 %v2655_v41 }
0x102b   :  { %4465 = vmatprep.subr.mxu0 %v3974_v5 }
0x10e4   :  { %v2735_v43 = vpop.f32.mrf.mxu1 }
0x10e5   :  { %v2815_v44 = vmul.f32 0.25, %v2735_v43 }
0x10e6   :  { %v4449_v45 = vpop.f32.mrf.mxu1 }
0x10e7   :  { %v2817_v46 = vadd.f32 %v4872_v63, %v2815_v44 }
0x10e8   :  { %v2811_v47 = vpop.f32.mrf.mxu1 }
0x10e9   :  { %v2816_v48 = vmul.f32 0.25, %v2811_v47  ;;  %v2819_v49 = vsel %vm570_vm3, %v2817_v46, -inf }
0x10ea   :  { %2820 = vmax.xlane.f32.xlu0 %v2819_v49  ;;  %v4454_v50 = vpop.f32.mrf.mxu1 }
0x10eb   :  { %v2818_v51 = vadd.f32 %v4878_v4, %v2816_v48  ;;  %v3942_v4 = vld [vmem:[%s5532_s29 + $0x28] sm:$0xff]  ;;  %v3983_v48 = vld [vmem:[%s5486_s13 + $0x1] ss:$0 sm:$0xff] }
0x10ec   :  { %4472 = vmatprep.subr.mxu1 %v3942_v4 }
0x10ed   :  { %v2822_v52 = vsel %vm570_vm3, %v2818_v51, -inf }
0x10ee   :  { %2823 = vmax.xlane.f32.xlu1 %v2822_v52 }
0x1173   :  { %v2821_v34 = vpop.xlane.xlu0 %2820 }
0x1174   :  { %v2825_v31 = vsub.f32 %v2817_v46, %v2821_v34  ;;  %v3984_v34 = vld [vmem:[%s5487_s14 + $0x1] ss:$0 sm:$0xff]  ;;  %s5533_s14 = sld [smem:[#allocation7_spill]] }
0x1176   :  { %v2827_v53 = vmul.f32 1.442695, %v2825_v31 }
0x1177   :  { %v2824_v54 = vpop.xlane.xlu1 %2823 }
0x1178   :  { %4570 = vpow2.f32 %v2827_v53  ;;  %v2826_v55 = vsub.f32 %v2818_v51, %v2824_v54 }
0x117a   :  { %v2829_v56 = vmul.f32 1.442695, %v2826_v55  ;;  %v4000_v55 = vld [vmem:[%s5490_s17 + $0x78] sm:$0xff] }
0x117c   :  { %4572 = vpow2.f32 %v2829_v56  ;;  %v3999_v56 = vld [vmem:[%s5490_s17 + $0x70] sm:$0xff] }
0x1185   :  { %v4571_v63 = vpop.eup %4570 }
0x1186   :  { %v2831_v57 = vsel %vm570_vm3, %v4571_v63, 0.0 }
0x1187   :  { %2832 = vadd.xlane.f32.xlu0 %v2831_v57  ;;  %v3997_v57 = vld [vmem:[%s5490_s17 + $0x60] sm:$0xff] }
0x1189   :  { %v4573_v58 = vpop.eup %4572 }
0x118a   :  { %v2834_v59 = vsel %vm570_vm3, %v4573_v58, 0.0 }
0x118b   :  { %2835 = vadd.xlane.f32.xlu1 %v2834_v59  ;;  %v3995_v59 = vld [vmem:[%s5490_s17 + $0x50] sm:$0xff] }
0x1210   :  { %v2833_v60 = vpop.xlane.xlu0 %2832 }
0x1211   :  { %4574 = vrcp.f32 %v2833_v60  ;;  %v3993_v60 = vld [vmem:[%s5490_s17 + $0x40] sm:$0xff] }
0x1214   :  { %v2836_v61 = vpop.xlane.xlu1 %2835 }
0x1215   :  { %4576 = vrcp.f32 %v2836_v61  ;;  %v3990_v61 = vld [vmem:[%s5489_s16 + $0x1] ss:$0 sm:$0xff] }
0x121e   :  { %v4575_v62 = vpop.eup %4574 }
0x121f   :  { %v2839_v0 = vmul.f32 %v4575_v62, %v4571_v63  ;;  %v3998_v63 = vld [vmem:[%s5490_s17 + $0x68] sm:$0xff] }
0x1221   :  { %4458 = vmatmul.mubr.msk.f32.vlgmr.msra.gmra.mxu0 %vm570_vm3, %v2839_v0 }
0x1222   :  { %v4577_v1 = vpop.eup %4576  ;;  %4466 = vmatpush3.msra.mxu0 %v3974_v5 }
0x1223   :  { %v2840_v2 = vmul.f32 %v4577_v1, %v4573_v58  ;;  %4467 = vmatprep.subr.mxu0 %v3973_v6  ;;  %v3996_v58 = vld [vmem:[%s5490_s17 + $0x58] sm:$0xff] }
0x1224   :  { %4468 = vmatpush3.msra.mxu0 %v3973_v6 }
0x1225   :  { %4463 = vmatmul.mubr.msk.f32.vlgmr.msra.gmra.mxu1 %vm570_vm3, %v2840_v2 }
0x1226   :  { %4473 = vmatpush3.msra.mxu1 %v3942_v4  ;;  %4476 = vmatprep.mubr.msk.f32.mxu1 %vm401_vm2, %v5190_v20  ;;  %v3994_v4 = vld [vmem:[%s5490_s17 + $0x48] sm:$0xff] }
0x1227   :  { %4474 = vmatprep.subr.mxu1 %v3941_v3 }
0x1228   :  { %4475 = vmatpush3.msra.mxu1 %v3941_v3 }
0x1229   :  { %4477 = vmatmul.mubr.msk.f32.vlgmr.msra.gmra.mxu1 %vm401_vm2, %v5188_v19  ;;  %4490 = vmatprep.subr.mxu1 %v4000_v55 }
0x122a   :  { %4491 = vmatpush3.msra.mxu1 %v4000_v55 }
0x122b   :  { %4492 = vmatprep.subr.mxu1 %v3999_v56 }
0x122c   :  { %4493 = vmatpush3.msra.mxu1 %v3999_v56 }
0x122d   :  { %4494 = vmatprep.subr.mxu1 %v3998_v63 }
0x122e   :  { %4495 = vmatpush3.msra.mxu1 %v3998_v63 }
0x122f   :  { %4496 = vmatprep.subr.mxu1 %v3997_v57 }
0x1230   :  { %4497 = vmatpush3.msra.mxu1 %v3997_v57  ;;  %v3468_v57 = vld [vmem:[%s5533_s14] sm:$0x3] }
0x1231   :  { %4498 = vmatprep.subr.mxu1 %v3996_v58 }
0x1232   :  { %4499 = vmatpush3.msra.mxu1 %v3996_v58  ;;  %v3545_v58 = vld [vmem:[%s5494_s21 + $0x18] sm:$0xff] }
0x1233   :  { %4500 = vmatprep.subr.mxu1 %v3995_v59 }
0x1234   :  { %4501 = vmatpush3.msra.mxu1 %v3995_v59  ;;  %v3544_v59 = vld [vmem:[%s5494_s21 + $0x10] sm:$0xff] }
0x1235   :  { %4502 = vmatprep.subr.mxu1 %v3994_v4 }
0x1236   :  { %4503 = vmatpush3.msra.mxu1 %v3994_v4  ;;  %v3543_v4 = vld [vmem:[%s5494_s21 + $0x8] sm:$0xff] }
0x1237   :  { %4504 = vmatprep.subr.mxu1 %v3993_v60 }
0x1238   :  { %4505 = vmatpush3.msra.mxu1 %v3993_v60  ;;  %v3542_v60 = vld [vmem:[%s5494_s21] sm:$0xff] }
0x12e1   :  { %v2910_v7 = vpop.f32.mrf.mxu0 }
0x12e2   :  { %4469 = vmatprep.mubr.msk.f32.mxu0 %vm401_vm2, %v2910_v7 }
0x12e3   :  { %v4459_v8 = vpop.f32.mrf.mxu0 }
0x12e5   :  { %v2983_v9 = vpop.f32.mrf.mxu1 }
0x12e6   :  { %4470 = vmatmul.mubr.msk.f32.vlgmr.msra.gmra.mxu0 %vm401_vm2, %v2983_v9 }
0x12e7   :  { %v4464_v10 = vpop.f32.mrf.mxu1 }
0x12e9   :  { %v4478_v11 = vpop.f32.mrf.mxu1 }
0x12eb   :  { %v3143_v15 = vpop.f32.mrf.mxu1 }
0x13a6   :  { %v4471_v12 = vpop.f32.mrf.mxu0 }
0x13a7   :  { %v3149_v14 = vadd.f32 %v4478_v11, %v4471_v12 }
0x13a8   :  { %v3062_v16 = vpop.f32.mrf.mxu0 }
0x13a9   :  { %v3161_v17 = vadd.f32 %v3980_v13, %v3149_v14  ;;  %v3144_v18 = vadd.f32 %v3143_v15, %v3062_v16 }
0x13ab   :  { %v3160_v19 = vadd.f32 %v3980_v13, %v3144_v18  ;;  %v3163_v20 = vadd.f32 %v3161_v17, %v5079_v23 }
0x13ad   :  { %v3171_v21 = vsel %vm91_vm0, %v3163_v20, 0.0  ;;  %v3162_v24 = vadd.f32 %v3160_v19, %v5077_v22  ;;  %v3988_v22 = vld [vmem:[%s5488_s15 + $0x38] sm:$0xff]  ;;  %s4616_s15 = smov [#allocation2]  }
0x13ae   :  { %3172 = vadd.xlane.f32.xlu1 %v3171_v21  ;;  %4479 = vmatprep.subr.mxu0 %v3988_v22  ;;  %s3837_s21 = sshll.u32 %s4616_s15, 4  ;;  %s3838_s21 = int_to_ptr.vmem [resolvable:$true] %s3837_s21 }
0x13af   :  { %v3168_v25 = vsel %vm91_vm0, %v3162_v24, 0.0  ;;  %4480 = vmatpush3.msra.mxu0 %v3988_v22  ;;  %p4597_p1 = scmp.lt.s32.totalorder %s3838_s21, %s3838_s21 }
0x13b0   :  { %3169 = vadd.xlane.f32.xlu0 %v3168_v25  ;;  %4481 = vmatprep.subr.mxu0 %v3987_v37 }
0x13b1   :  { %4482 = vmatpush3.msra.mxu0 %v3987_v37 }
0x13b2   :  { %4483 = vmatprep.subr.mxu0 %v3986_v38 }
0x13b3   :  { %4484 = vmatpush3.msra.mxu0 %v3986_v38 }
0x13b4   :  { %4485 = vmatprep.subr.mxu0 %v3985_v39 }
0x13b5   :  { %4486 = vmatpush3.msra.mxu0 %v3985_v39 }
0x13b6   :  { %4509 = vmatprep.subr.mxu0 %v4614_v42 }
0x1437   :  { %v3173_v26 = vpop.xlane.xlu1 %3172 }
0x1438   :  { %v3175_v27 = vmul.f32 0.03125, %v3173_v26 }
0x1439   :  { %v3170_v28 = vpop.xlane.xlu0 %3169 }
0x143a   :  { %v3177_v29 = vsub.f32 %v3163_v20, %v3175_v27  ;;  %v3174_v30 = vmul.f32 0.03125, %v3170_v28 }
0x143c   :  { %v3176_v32 = vsub.f32 %v3162_v24, %v3174_v30  ;;  %v3179_v33 = vmul.f32 %v3177_v29, %v3177_v29  ;;  %v4002_v24 = vld [vmem:[%s5491_s18 + $0x1] ss:$0 sm:$0xff] }
0x143e   :  { %v3183_v35 = vsel %vm91_vm0, %v3179_v33, 0.0  ;;  %v3178_v36 = vmul.f32 %v3176_v32, %v3176_v32 }
0x143f   :  { %3184 = vadd.xlane.f32.xlu1 %v3183_v35 }
0x1440   :  { %v3180_v23 = vsel %vm91_vm0, %v3178_v36, 0.0 }
0x1441   :  { %3181 = vadd.xlane.f32.xlu0 %v3180_v23 }
0x14c8   :  { %v3185_v40 = vpop.xlane.xlu1 %3184 }
0x14c9   :  { %v3187_v41 = vmul.f32 0.03125, %v3185_v40 }
0x14ca   :  { %v3182_v43 = vpop.xlane.xlu0 %3181 }
0x14cb   :  { %v3189_v44 = vadd.f32 1e-12, %v3187_v41  ;;  %v3186_v45 = vmul.f32 0.03125, %v3182_v43 }
0x14cd   :  { %4578 = vrsqrt.f32 %v3189_v44  ;;  %v3188_v46 = vadd.f32 1e-12, %v3186_v45 }
0x14cf   :  { %4580 = vrsqrt.f32 %v3188_v46 }
0x14da   :  { %v4579_v47 = vpop.eup %4578 }
0x14db   :  { %v3193_v49 = vmul.f32 %v4579_v47, %v3177_v29 }
0x14dc   :  { %v4581_v50 = vpop.eup %4580 }
0x14dd   :  { %v3192_v51 = vmul.f32 %v4581_v50, %v3176_v32  ;;  %v3201_v52 = vmul.f32 %v3983_v48, %v3193_v49 }
0x14df   :  { %v3200_v31 = vmul.f32 %v3983_v48, %v3192_v51  ;;  %v3209_v54 = vadd.f32 %v3984_v34, %v3201_v52  ;;  %v4007_v51 = vld [vmem:[%s5492_s19 + $0x1] ss:$0 sm:$0xff] }
0x14e1   :  { %v5265_v53 = vadd.f32 %v3984_v34, %v3200_v31  ;;  %v4008_v31 = vld [vmem:[%s5493_s20 + $0x1] ss:$0 sm:$0xff] }
0x14e3   :  { %4487 = vmatprep.mubr.msk.f32.mxu0 %vm91_vm0, %v5265_v53 }
0x14e4   :  { %4488 = vmatmul.mubr.msk.f32.vlgmr.msra.gmra.mxu0 %vm91_vm0, %v3209_v54 }
0x14e5   :  { %4513 = vmatprep.mubr.msk.f32.mxu0 %vm4615_vm1, %v4614_v42 }
0x15a4   :  { %v4489_v62 = vpop.f32.mrf.mxu0 }
0x15a5   :  { %v3301_v0 = vadd.f32 %v4489_v62, %v3990_v61 }
0x15a6   :  { %v3295_v1 = vpop.f32.mrf.mxu0 }
0x15a7   :  { %v3307_v2 = vmul.f32 0.044715, %v3301_v0  ;;  %v3296_v3 = vadd.f32 %v3990_v61, %v3295_v1  ;;  %v3305_v19 = vmul.f32 0.5, %v3301_v0  ;;  %v3633_v1 = vld [vmem:[%s5496_s23 + $0x30] sm:$0xff] }
0x15a9   :  { %v3309_v5 = vmul.f32 %v3307_v2, %v3301_v0  ;;  %v3306_v6 = vmul.f32 0.044715, %v3296_v3  ;;  %v3304_v17 = vmul.f32 0.5, %v3296_v3  ;;  %v3631_v2 = vld [vmem:[%s5496_s23 + $0x20] sm:$0xff] }
0x15ab   :  { %v3311_v7 = vmul.f32 %v3309_v5, %v3301_v0  ;;  %v3308_v8 = vmul.f32 %v3306_v6, %v3296_v3  ;;  %v3629_v5 = vld [vmem:[%s5496_s23 + $0x10] sm:$0xff]  ;;  %v3628_v6 = vld [vmem:[%s5496_s23 + $0x8] sm:$0xff] }
0x15ad   :  { %v3313_v9 = vadd.f32 %v3311_v7, %v3301_v0  ;;  %v3310_v10 = vmul.f32 %v3308_v8, %v3296_v3  ;;  %v3634_v0 = vld [vmem:[%s5496_s23 + $0x38] sm:$0xff]  ;;  %v3627_v7 = vld [vmem:[%s5496_s23] sm:$0xff] }
0x15ae   :  { %3674 = vmatprep.subr.mxu1 %v3634_v0  ;;  %v3752_v8 = vld [vmem:[%s5498_s25 + $0xf8] sm:$0xff] }
0x15af   :  { %v3315_v11 = vmul.f32 0.7978846, %v3313_v9  ;;  %v3312_v12 = vadd.f32 %v3310_v10, %v3296_v3  ;;  %v3630_v3 = vld [vmem:[%s5496_s23 + $0x18] sm:$0xff]  ;;  %v3751_v10 = vld [vmem:[%s5498_s25 + $0xf0] sm:$0xff] }
0x15b0   :  { %v3736_v9 = vld [vmem:[%s5498_s25 + $0x78] sm:$0xff] }
0x15b1   :  { %4582 = vtanh.f32 %v3315_v11  ;;  %v3314_v13 = vmul.f32 0.7978846, %v3312_v12  ;;  %v3735_v11 = vld [vmem:[%s5498_s25 + $0x70] sm:$0xff]  ;;  %v3750_v12 = vld [vmem:[%s5498_s25 + $0xe8] sm:$0xff] }
0x15b3   :  { %4584 = vtanh.f32 %v3314_v13  ;;  %v3734_v13 = vld [vmem:[%s5498_s25 + $0x68] sm:$0xff] }
0x15be   :  { %v4583_v14 = vpop.eup %4582 }
0x15bf   :  { %v3319_v16 = vadd.f32 1.0, %v4583_v14  ;;  %v3749_v14 = vld [vmem:[%s5498_s25 + $0xe0] sm:$0xff] }
0x15c0   :  { %v4585_v15 = vpop.eup %4584 }
0x15c1   :  { %v3318_v18 = vadd.f32 1.0, %v4585_v15  ;;  %v3321_v21 = vmul.f32 %v3319_v16, %v3305_v19  ;;  %v3733_v15 = vld [vmem:[%s5498_s25 + $0x60] sm:$0xff]  ;;  %v3748_v16 = vld [vmem:[%s5498_s25 + $0xd8] sm:$0xff]  ;;  %v3731_v19 = vld [vmem:[%s5498_s25 + $0x50] sm:$0xff] }
0x15c3   :  { %v3320_v20 = vmul.f32 %v3318_v18, %v3304_v17  ;;  %v3732_v17 = vld [vmem:[%s5498_s25 + $0x58] sm:$0xff]  ;;  %v3747_v18 = vld [vmem:[%s5498_s25 + $0xd0] sm:$0xff] }
0x15c5   :  { %4506 = vmatprep.mubr.msk.f32.mxu1 %vm1674_vm4, %v3320_v20  ;;  %v3746_v20 = vld [vmem:[%s5498_s25 + $0xc8] sm:$0xff] }
0x15c6   :  { %4507 = vmatmul.mubr.msk.f32.vlgmr.msra.gmra.mxu1 %vm1674_vm4, %v3321_v21  ;;  %v3730_v21 = vld [vmem:[%s5498_s25 + $0x48] sm:$0xff] }
0x15c7   :  { %3714 = vmatprep.mubr.f32.mxu1 %v4614_v42  ;;  %3675 = vmatpush1.msra.mxu1 %v3633_v1 }
0x1686   :  { %v4508_v25 = vpop.f32.mrf.mxu1 }
0x1687   :  { %v3417_v26 = vadd.f32 %v4508_v25, %v4002_v24  ;;  %v3729_v25 = vld [vmem:[%s5498_s25 + $0x40] sm:$0xff] }
0x1688   :  { %v3411_v27 = vpop.f32.mrf.mxu1 }
0x1689   :  { %v3412_v28 = vadd.f32 %v4002_v24, %v3411_v27  ;;  %v3421_v29 = vadd.f32 %v3417_v26, %v3209_v54  ;;  %v3745_v24 = vld [vmem:[%s5498_s25 + $0xc0] sm:$0xff]  ;;  %v3744_v26 = vld [vmem:[%s5498_s25 + $0xb8] sm:$0xff] }
0x168a   :  { %v3728_v27 = vld [vmem:[%s5498_s25 + $0x38] sm:$0xff] }
0x168b   :  { %v3429_v30 = vsel %vm91_vm0, %v3421_v29, 0.0  ;;  %v3420_v32 = vadd.f32 %v3412_v28, %v5265_v53  ;;  %v3743_v28 = vld [vmem:[%s5498_s25 + $0xb0] sm:$0xff] }
0x168c   :  { %3430 = vadd.xlane.f32.xlu0 %v3429_v30  ;;  %v3742_v30 = vld [vmem:[%s5498_s25 + $0xa8] sm:$0xff] }
0x168d   :  { %v3426_v33 = vsel %vm91_vm0, %v3420_v32, 0.0 }
0x168e   :  { %3427 = vadd.xlane.f32.xlu1 %v3426_v33  ;;  %v3741_v33 = vld [vmem:[%s5498_s25 + $0xa0] sm:$0xff] }
0x1715   :  { %v3431_v35 = vpop.xlane.xlu0 %3430 }
0x1716   :  { %v3433_v36 = vmul.f32 0.03125, %v3431_v35  ;;  %v3725_v35 = vld [vmem:[%s5498_s25 + $0x20] sm:$0xff] }
0x1717   :  { %v3428_v23 = vpop.xlane.xlu1 %3427 }
0x1718   :  { %v3435_v22 = vsub.f32 %v3421_v29, %v3433_v36  ;;  %v3432_v37 = vmul.f32 0.03125, %v3428_v23  ;;  %v3727_v29 = vld [vmem:[%s5498_s25 + $0x30] sm:$0xff]  ;;  %v3740_v36 = vld [vmem:[%s5498_s25 + $0x98] sm:$0xff] }
0x1719   :  { %v3724_v23 = vld [vmem:[%s5498_s25 + $0x18] sm:$0xff] }
0x171a   :  { %v3434_v38 = vsub.f32 %v3420_v32, %v3432_v37  ;;  %v3437_v39 = vmul.f32 %v3435_v22, %v3435_v22  ;;  %v3726_v32 = vld [vmem:[%s5498_s25 + $0x28] sm:$0xff] }
0x171c   :  { %v3441_v40 = vsel %vm91_vm0, %v3437_v39, 0.0  ;;  %v3436_v41 = vmul.f32 %v3434_v38, %v3434_v38 }
0x171d   :  { %3442 = vadd.xlane.f32.xlu0 %v3441_v40 }
0x171e   :  { %v3438_v43 = vsel %vm91_vm0, %v3436_v41, 0.0  ;;  %v3739_v41 = vld [vmem:[%s5498_s25 + $0x90] sm:$0xff] }
0x171f   :  { %3439 = vadd.xlane.f32.xlu1 %v3438_v43  ;;  %v3723_v43 = vld [vmem:[%s5498_s25 + $0x10] sm:$0xff] }
0x17a6   :  { %v3443_v44 = vpop.xlane.xlu0 %3442 }
0x17a7   :  { %v3445_v45 = vmul.f32 0.03125, %v3443_v44  ;;  %v3738_v44 = vld [vmem:[%s5498_s25 + $0x88] sm:$0xff] }
0x17a8   :  { %v3440_v46 = vpop.xlane.xlu1 %3439 }
0x17a9   :  { %v3447_v47 = vadd.f32 1e-12, %v3445_v45  ;;  %v3444_v48 = vmul.f32 0.03125, %v3440_v46  ;;  %v3722_v45 = vld [vmem:[%s5498_s25 + $0x8] sm:$0xff]  ;;  %v3737_v46 = vld [vmem:[%s5498_s25 + $0x80] sm:$0xff] }
0x17ab   :  { %4586 = vrsqrt.f32 %v3447_v47  ;;  %v3446_v49 = vadd.f32 1e-12, %v3444_v48  ;;  %v3721_v47 = vld [vmem:[%s5498_s25] sm:$0xff]  ;;  %v3637_v48 = vlaneseq }
0x17ad   :  { %4588 = vrsqrt.f32 %v3446_v49  ;;  %v3638_v49 = vshrl.u32 %v3637_v48, 7 }
0x17b8   :  { %v4587_v50 = vpop.eup %4586 }
0x17b9   :  { %v3451_v52 = vmul.f32 %v4587_v50, %v3435_v22  ;;  %v4010_v22 = vld [vmem:[%s5495_s22] ss:$0 sm:$0xff]  ;;  %v3643_v50 = vsub.s32 1, %v3638_v49 }
0x17ba   :  { %v4589_v34 = vpop.eup %4588 }
0x17bb   :  { %v3459_v53 = vmul.f32 %v4007_v51, %v3451_v52  ;;  %v3450_v54 = vmul.f32 %v4589_v34, %v3434_v38  ;;  %v3635_v52 = vld [vmem:[%s5497_s24] sm:$0x3]  ;;  %s4592_s24 = scalar_lea.vmem %s3838_s21, 32 }
0x17bc   :  { %v3644_v34 = vrot.slane %v3635_v52, %v3643_v50  ;;  %p4593_p0 = scmp.ne.s32.totalorder %s3838_s21, %s4592_s24  ;;  %p4598_p2 = scmp.lt.s32.totalorder %s4592_s24, %s4592_s24 }
0x17bd   :  { %v3467_v55 = vadd.f32 %v4008_v31, %v3459_v53  ;;  %v3458_v56 = vmul.f32 %v4007_v51, %v3450_v54  ;;  %v3639_v51 = vsub.s32 0, %v3638_v49 }
0x17be   :  { %p4599_p3 = por %p4598_p2, %p4597_p1 }
0x17bf   :  { %4510 = vmatpush3.msra.mxu0 %v3467_v55  ;;  %v3466_v63 = vadd.f32 %v4008_v31, %v3458_v56  ;;  %v3640_v31 = vrot.slane %v3635_v52, %v3639_v51 }
0x17c0   :  { %4511 = vmatprep.subr.mxu0 %v4614_v42  ;;  %p4600_p4 = pnand %p4599_p3, %p4593_p0 }
0x17c1   :  { %4512 = vmatpush3.msra.mxu0 %v3466_v63 }
0x17c2   :  { %4514 = vmatmul.mubr.msk.f32.vlgmr.msra.gmra.mxu0 %vm401_vm2, %v3468_v57  ;;  %4516 = vmatprep.subr.mxu0 %v4614_v42 }
0x17c3   :  { %4517 = vmatpush3.msra.mxu0 %v3545_v58  ;;  %4524 = vmatprep.mubr.msk.f32.mxu0 %vm4615_vm1, %v4614_v42  ;;  %v4013_v58 = vld [vmem:[%s5499_s26] ss:$0 sm:$0xff] }
0x17c4   :  { %4518 = vmatprep.subr.mxu0 %v4614_v42 }
0x17c5   :  { %4519 = vmatpush3.msra.mxu0 %v3544_v59 }
0x17c6   :  { %4520 = vmatprep.subr.mxu0 %v4614_v42 }
0x17c7   :  { %4521 = vmatpush3.msra.mxu0 %v3543_v4 }
0x17c8   :  { %4522 = vmatprep.subr.mxu0 %v4614_v42  ;;  %v3632_v42 = vld [vmem:[%s5496_s23 + $0x28] sm:$0xff] }
0x17c9   :  { %4523 = vmatpush3.msra.mxu0 %v3542_v60  ;;  %3676 = vmatprep.subr.mxu1 %v3632_v42 }
0x17ca   :  { %3677 = vmatpush1.msra.mxu1 %v3631_v2  ;;  %4174 = vmatprep.subr.mxu0 %v3752_v8 }
0x17cb   :  { %3678 = vmatprep.subr.mxu1 %v3630_v3 }
0x17cc   :  { %3679 = vmatpush1.msra.mxu1 %v3629_v5 }
0x17cd   :  { %3680 = vmatprep.subr.mxu1 %v3628_v6 }
0x17ce   :  { %3681 = vmatpush1.msra.mxu1 %v3627_v7 }
0x1882   :  { %v3538_v61 = vpop.f32.mrf.mxu0 }
0x1883   :  { %4525 = vmatmul.mubr.msk.f32.vlgmr.msra.gmra.mxu0 %vm91_vm0, %v3538_v61 }
0x1884   :  { %v4515_v62 = vpop.f32.mrf.mxu0  ;;  %4175 = vmatpush3.msra.mxu0 %v3736_v9 }
0x1885   :  { %4176 = vmatprep.subr.mxu0 %v3751_v10 }
0x1886   :  { %4177 = vmatpush3.msra.mxu0 %v3735_v11 }
0x1887   :  { %4178 = vmatprep.subr.mxu0 %v3750_v12 }
0x1888   :  { %4179 = vmatpush3.msra.mxu0 %v3734_v13 }
0x1889   :  { %4180 = vmatprep.subr.mxu0 %v3749_v14 }
0x188a   :  { %4181 = vmatpush3.msra.mxu0 %v3733_v15 }
0x188b   :  { %4182 = vmatprep.subr.mxu0 %v3748_v16 }
0x188c   :  { %4183 = vmatpush3.msra.mxu0 %v3732_v17 }
0x188d   :  { %4184 = vmatprep.subr.mxu0 %v3747_v18 }
0x188e   :  { %4185 = vmatpush3.msra.mxu0 %v3731_v19 }
0x188f   :  { %4186 = vmatprep.subr.mxu0 %v3746_v20 }
0x1890   :  { %4187 = vmatpush3.msra.mxu0 %v3730_v21 }
0x1891   :  { %4188 = vmatprep.subr.mxu0 %v3745_v24 }
0x1892   :  { %4189 = vmatpush3.msra.mxu0 %v3729_v25 }
0x1893   :  { %4190 = vmatprep.subr.mxu0 %v3744_v26 }
0x1894   :  { %4191 = vmatpush3.msra.mxu0 %v3728_v27 }
0x1895   :  { %4192 = vmatprep.subr.mxu0 %v3743_v28 }
0x1896   :  { %4193 = vmatpush3.msra.mxu0 %v3727_v29 }
0x1897   :  { %4194 = vmatprep.subr.mxu0 %v3742_v30 }
0x1898   :  { %4195 = vmatpush3.msra.mxu0 %v3726_v32 }
0x1899   :  { %4196 = vmatprep.subr.mxu0 %v3741_v33 }
0x189a   :  { %4197 = vmatpush3.msra.mxu0 %v3725_v35 }
0x189b   :  { %4198 = vmatprep.subr.mxu0 %v3740_v36 }
0x189c   :  { %4199 = vmatpush3.msra.mxu0 %v3724_v23 }
0x189d   :  { %4200 = vmatprep.subr.mxu0 %v3739_v41 }
0x189e   :  { %4201 = vmatpush3.msra.mxu0 %v3723_v43 }
0x189f   :  { %4202 = vmatprep.subr.mxu0 %v3738_v44 }
0x18a0   :  { %4203 = vmatpush3.msra.mxu0 %v3722_v45 }
0x18a1   :  { %4204 = vmatprep.subr.mxu0 %v3737_v46 }
0x18a2   :  { %4205 = vmatpush3.msra.mxu0 %v3721_v47 }
0x1943   :  { %v3622_v37 = vpop.f32.mrf.mxu0 }
0x1944   :  { %v3623_v38 = vadd.f32 %v4010_v22, %v3622_v37 }
0x1945   :  { %v4526_v39 = vpop.f32.mrf.mxu0 }
0x1946   :  { %4590 = vtanh.f32 %v3623_v38 }
0x1953   :  { %v4591_v40 = vpop.eup %4590 }
0x1954   :  { %4012 = vmatmul.mubr.msk.f32.vlgmr.msra.gmra.mxu1 %vm91_vm0, %v4591_v40 }
0x1a14   :  { %v3716_v53 = vpop.f32.mrf.mxu1 }
0x1a15   :  { %v3717_v56 = vadd.f32 %v3716_v53, %v3640_v31 }
0x1a16   :  { %v3718_v54 = vpop.f32.mrf.mxu1 }
0x1a17   :  { %v3719_v55 = vadd.f32 %v3718_v54, %v3644_v34 }
0x1a19   :  { %3824 = vmatprep.mubr.f32.mxu0 %v3719_v55 }
0x1a1a   :  { %3825 = vmatmul.mubr.f32.vlgmr.msra.gmra.mxu0 %v3717_v56 }
0x1ada   :  { %v4206_v63 = vpop.f32.mrf.mxu0 }
0x1adc   :  { %v4207_v57 = vpop.f32.mrf.mxu0 }
0x1add   :  { %v4208_v59 = vadd.f32 %v4207_v57, %v4206_v63 }
0x1adf   :  { %v3827_v4 = vadd.f32 %v4208_v59, %v4013_v58 }
0x1ae1   :  { %3830 = vst [vmem:[#allocation2] sm:$0x3] %v3827_v4 }
0x1ae2   :  { %4603 = shalt.err (!%p4600_p4)
}
0x1ae3   :  { %3840 = dma.vmem_to_hbm [thread:$0]  %s3838_s21, 32, %s5500_s27, [#allocation3]  }
0x1ae4   :  { %4612 = dma.done.wait [#allocation3], 32  }
0x1ae5   :  { %4613 = vsyncadd [#allocation3], 4294967264 }
0x1ae6   :  { %3844 = vsyncpa [#allocation3], 1 }

</bundles_post_ra>
